<compile_context>
chip_gen: v7x
topology: tpu7x:2x2x1
jax: 0.10.0
libtpu: 0.0.40
codegen_flags: <defaults>
</compile_context>

<pallas_src>
import functools

import jax
import jax.numpy as jnp
from jax import lax
from jax.experimental import pallas as pl
from jax.experimental.pallas import tpu as pltpu

# Set to jnp.bfloat16 on v6e / v7x for ~2x MXU throughput and half the DMA
# bytes (accumulation stays f32 via preferred_element_type). Kept f32 by
# default to preserve reference numerics.
MATMUL_DTYPE = jnp.float32


def _mm_cast(x):
    return x if MATMUL_DTYPE == jnp.float32 else x.astype(MATMUL_DTYPE)


# ---------------------------- Pallas kernels ----------------------------

def _conv_pool_kernel(p_ref, w_ref, b_ref, o_ref, *, taps):
    """Fused conv (im2col matmul) + bias + max-pool + ReLU, one batch item.

    p_ref: (1, taps, M, Kred)  im2col patches, one slab per pool-window tap
    w_ref: (Kred, OC)          conv weights in (ki, kj, ic) x oc order
    b_ref: (1, OC)
    o_ref: (1, M, OC)          pooled + ReLU'd activations, M = PH*PW
    """
    w = w_ref[...]
    acc = None
    for t in range(taps):
        y = jnp.dot(p_ref[0, t], w, preferred_element_type=jnp.float32)
        acc = y if acc is None else jnp.maximum(acc, y)
    # bias is tap-invariant and relu/max commute, so add + relu once at the end
    o_ref[0] = jnp.maximum(acc + b_ref[...], 0.0)


def _conv_pool_fc_kernel(p_ref, wc_ref, bc_ref, w1_ref, b1_ref, w2_ref, b2_ref,
                         o_ref, *, taps, n_pos):
    """Final conv stage fused with the fc_loc head, one batch item per step.

    p_ref:  (1, taps, n_pos, Kred)   im2col patches
    wc_ref: (Kred, OC)               conv weights
    bc_ref: (1, OC)
    w1_ref: (n_pos, OC, H1)          fc1 weights regrouped per spatial position
    b1_ref: (1, H1)
    w2_ref: (H1, 6)
    b2_ref: (1, 6)
    o_ref:  (1, 1, 6)                theta row for this batch item
    """
    wc = wc_ref[...]
    acc = None
    for t in range(taps):
        y = jnp.dot(p_ref[0, t], wc, preferred_element_type=jnp.float32)
        acc = y if acc is None else jnp.maximum(acc, y)
    xs = jnp.maximum(acc + bc_ref[...], 0.0)                     # (n_pos, OC)
    # fc1: flattened (spatial, channel) dot == sum over spatial positions
    h = b1_ref[...]                                              # (1, H1)
    for j in range(n_pos):
        h = h + jnp.dot(xs[j:j + 1, :], w1_ref[j],
                        preferred_element_type=jnp.float32)
    h = jnp.maximum(h, 0.0)
    o_ref[0] = jnp.dot(h, w2_ref[...],
                       preferred_element_type=jnp.float32) + b2_ref[...]


def _sample_kernel(x_ref, k_ref, o_ref):
    # x_ref: (1, C, Q), k_ref: (1, Q, P) -> o_ref: (1, C, P); P is lane-dense.
    o_ref[0] = jnp.dot(x_ref[0], k_ref[0], preferred_element_type=jnp.float32)


# ------------------------------ JAX glue --------------------------------

def _im2col_pool_taps(x_nhwc, kk, pk, ps):
    """Channels-last im2col with one patch matrix per pool-window tap.

    Returns (B, pk*pk, PH*PW, kk*kk*IC) and the pooled spatial shape.  Row
    (b, t, m) holds the conv receptive field of the t-th element of pool
    window m, flattened in (ki, kj, ic) order.
    """
    B, H, W, IC = x_nhwc.shape
    OH, OW = H - kk + 1, W - kk + 1
    PH = (OH - pk) // ps + 1
    PW = (OW - pk) // ps + 1
    cache = {}

    def shifted(r0, c0):
        if (r0, c0) not in cache:
            cache[(r0, c0)] = x_nhwc[:, r0:r0 + ps * (PH - 1) + 1:ps,
                                        c0:c0 + ps * (PW - 1) + 1:ps, :]
        return cache[(r0, c0)]

    taps = []
    for di in range(pk):
        for dj in range(pk):
            cols = [shifted(di + ki, dj + kj)
                    for ki in range(kk) for kj in range(kk)]
            tap = jnp.concatenate(cols, axis=-1)        # (B, PH, PW, kk*kk*IC)
            taps.append(tap.reshape(B, PH * PW, kk * kk * IC))
    return jnp.stack(taps, axis=1), PH, PW


def conv_pool_relu_stage(x_nhwc, w, b, pk, ps):
    """Conv2d(valid, stride 1) + MaxPool2d(pk, ps) + ReLU in one pallas_call."""
    B, H, W, IC = x_nhwc.shape
    OC, IC2, kk, _ = w.shape
    assert IC == IC2
    patches, PH, PW = _im2col_pool_taps(x_nhwc, kk, pk, ps)
    T, M, Kred = pk * pk, PH * PW, kk * kk * IC
    wf = jnp.transpose(w, (2, 3, 1, 0)).reshape(Kred, OC)     # (ki,kj,ic) x oc
    bf = b.reshape(1, OC)

    kern = functools.partial(_conv_pool_kernel, taps=T)
    cost = pl.CostEstimate(
        flops=int(2 * B * T * M * Kred * OC), transcendentals=0,
        bytes_accessed=int(4 * (B * T * M * Kred + Kred * OC + OC + B * M * OC)))
    out = pl.pallas_call(
        kern,
        out_shape=jax.ShapeDtypeStruct((B, M, OC), jnp.float32),
        grid=(B,),
        in_specs=[pl.BlockSpec((1, T, M, Kred), lambda bb: (bb, 0, 0, 0)),
                  pl.BlockSpec((Kred, OC), lambda bb: (0, 0)),
                  pl.BlockSpec((1, OC), lambda bb: (0, 0))],
        out_specs=pl.BlockSpec((1, M, OC), lambda bb: (bb, 0, 0)),
        compiler_params=pltpu.CompilerParams(dimension_semantics=("parallel",)),
        cost_estimate=cost,
    )(_mm_cast(patches), _mm_cast(wf), bf)
    return out.reshape(B, PH, PW, OC)          # NHWC, contiguous (free) reshape


def conv_pool_fc_stage(x_nhwc, w, b, pk, ps, w1_stacked, b1, w2t, b2):
    """Final conv stage fused with fc_loc (Linear->ReLU->Linear): theta (B, 6)."""
    B, H, W, IC = x_nhwc.shape
    OC, IC2, kk, _ = w.shape
    assert IC == IC2
    patches, PH, PW = _im2col_pool_taps(x_nhwc, kk, pk, ps)
    T, M, Kred = pk * pk, PH * PW, kk * kk * IC
    assert w1_stacked.shape[:2] == (M, OC), "fc1 layout mismatch"
    H1 = w1_stacked.shape[2]
    NO = w2t.shape[1]
    wf = jnp.transpose(w, (2, 3, 1, 0)).reshape(Kred, OC)
    bf = b.reshape(1, OC)

    kern = functools.partial(_conv_pool_fc_kernel, taps=T, n_pos=M)
    cost = pl.CostEstimate(
        flops=int(2 * B * (T * M * Kred * OC + M * OC * H1 + H1 * NO)),
        transcendentals=0,
        bytes_accessed=int(4 * (B * T * M * Kred + Kred * OC + M * OC * H1
                                + H1 * NO + B * NO)))
    theta = pl.pallas_call(
        kern,
        out_shape=jax.ShapeDtypeStruct((B, 1, NO), jnp.float32),
        grid=(B,),
        in_specs=[pl.BlockSpec((1, T, M, Kred), lambda bb: (bb, 0, 0, 0)),
                  pl.BlockSpec((Kred, OC), lambda bb: (0, 0)),
                  pl.BlockSpec((1, OC), lambda bb: (0, 0)),
                  pl.BlockSpec((M, OC, H1), lambda bb: (0, 0, 0)),
                  pl.BlockSpec((1, H1), lambda bb: (0, 0)),
                  pl.BlockSpec((H1, NO), lambda bb: (0, 0)),
                  pl.BlockSpec((1, NO), lambda bb: (0, 0))],
        out_specs=pl.BlockSpec((1, 1, NO), lambda bb: (bb, 0, 0)),
        compiler_params=pltpu.CompilerParams(dimension_semantics=("parallel",)),
        cost_estimate=cost,
    )(_mm_cast(patches), _mm_cast(wf), bf, w1_stacked,
      b1.reshape(1, H1), w2t, b2.reshape(1, NO))
    return theta.reshape(B, NO)


def affine_grid(theta, H, W):
    """Matches F.affine_grid(theta, (B, C, H, W)), align_corners=False."""
    xs = (2.0 * jnp.arange(W, dtype=jnp.float32) + 1.0 - W) / W
    ys = (2.0 * jnp.arange(H, dtype=jnp.float32) + 1.0 - H) / H
    gx = jnp.broadcast_to(xs[None, :], (H, W))
    gy = jnp.broadcast_to(ys[:, None], (H, W))
    base = jnp.stack([gx, gy, jnp.ones((H, W), jnp.float32)], axis=-1)  # (H,W,3)
    return jnp.einsum('hwk,bnk->bhwn', base, theta)    # (B, H, W, 2) -> (x, y)


def bilinear_weight_matrix(grid, H_in, W_in):
    """Dense bilinear sampling weights, built directly in (B, Q, P) layout.

    Reproduces F.grid_sample defaults (bilinear, zeros padding,
    align_corners=False) exactly.
    """
    B, H_out, W_out, _ = grid.shape
    P = H_out * W_out
    ix = ((grid[..., 0].reshape(B, P) + 1.0) * W_in - 1.0) / 2.0      # (B, P)
    iy = ((grid[..., 1].reshape(B, P) + 1.0) * H_in - 1.0) / 2.0
    xs = jnp.arange(W_in, dtype=jnp.float32)
    ys = jnp.arange(H_in, dtype=jnp.float32)
    wx = jnp.maximum(0.0, 1.0 - jnp.abs(ix[..., None] - xs))          # (B,P,Win)
    wy = jnp.maximum(0.0, 1.0 - jnp.abs(iy[..., None] - ys))          # (B,P,Hin)
    kT = jnp.einsum('bpy,bpx->byxp', wy, wx)                          # (B,Hin,Win,P)
    return kT.reshape(B, H_in * W_in, P)                              # (B, Q, P)


def grid_sample_matmul(x_nchw, k_t):
    """x: (B, C, H, W) NCHW; k_t: (B, Q, P) bilinear weights -> (B, C, H, W)."""
    B, C, H, W = x_nchw.shape
    Q = H * W
    P = k_t.shape[2]
    x_flat = x_nchw.reshape(B, C, Q)                    # contiguous, free
    cost = pl.CostEstimate(flops=int(2 * B * C * Q * P), transcendentals=0,
                           bytes_accessed=int(4 * B * (C * Q + Q * P + C * P)))
    # TODO(synk): for large H, W replace the dense (Q, P) weight matmul with a
    # 4-tap gather (scalar-prefetched indices) and tile the P axis with a grid;
    # the dense K is O((HW)^2) and is the first thing to exceed v7x's 64 MiB VMEM.
    out = pl.pallas_call(
        _sample_kernel,
        out_shape=jax.ShapeDtypeStruct((B, C, P), jnp.float32),
        grid=(B,),
        in_specs=[pl.BlockSpec((1, C, Q), lambda bb: (bb, 0, 0)),
                  pl.BlockSpec((1, Q, P), lambda bb: (bb, 0, 0))],
        out_specs=pl.BlockSpec((1, C, P), lambda bb: (bb, 0, 0)),
        compiler_params=pltpu.CompilerParams(dimension_semantics=("parallel",)),
        cost_estimate=cost,
    )(_mm_cast(x_flat), _mm_cast(k_t))
    return out.reshape(B, C, H, W)


# ------------------------------- STN model ------------------------------

class STNPallas:
    def __init__(self, key, im_shape, n_channels, conv_out_channels,
                 conv_kerns, pool_kerns, pool_strides):
        assert len(conv_out_channels) == len(conv_kerns) == len(pool_kerns) \
            == len(pool_strides)
        self.im_shape = im_shape
        self.conv_kerns = conv_kerns
        self.pool_kerns = pool_kerns
        self.pool_strides = pool_strides
        self.num_layers = len(conv_kerns)

        self.out_shape = self._compute_out_im_shape(im_shape)
        assert conv_out_channels[-1] == 128, "fc_loc assumes 128 final channels"
        fc_in = 128 * self.out_shape[0] * self.out_shape[1]

        # deterministic synthetic params (PyTorch layouts, then re-laid out)
        keys = jax.random.split(key, 2 * self.num_layers + 2)
        self.conv_params = []
        ic = n_channels
        for i, oc in enumerate(conv_out_channels):
            kk = conv_kerns[i]
            w = 0.05 * jax.random.normal(keys[2 * i], (oc, ic, kk, kk), jnp.float32)
            b = 0.05 * jax.random.normal(keys[2 * i + 1], (oc,), jnp.float32)
            self.conv_params.append((w, b))
            ic = oc
        # fc1 weight in PyTorch layout (256, fc_in), fc_in flattened as (C, H, W).
        fc1_w = 0.05 * jax.random.normal(keys[-2], (256, fc_in), jnp.float32)
        self.fc1_b = 0.05 * jax.random.normal(keys[-1], (256,), jnp.float32)
        # Regroup fc1 columns to the kernel's channels-last activation layout:
        # (256, C, H, W) -> (H*W, C, 256). Same function, different column order.
        H2, W2 = self.out_shape
        oc_last = conv_out_channels[-1]
        self.fc1_w_stacked = jnp.transpose(
            fc1_w.reshape(256, oc_last, H2, W2), (2, 3, 1, 0)
        ).reshape(H2 * W2, oc_last, 256)
        self.fc2_wT = jnp.zeros((256, 6), jnp.float32)                # .zero_()
        self.fc2_b = jnp.array([0.3, 0.0, -0.2, 0.0, 0.3, -0.1], jnp.float32)

    def _compute_out_im_shape(self, im_shape):
        h, w = im_shape
        for i in range(self.num_layers):
            h = h - (self.conv_kerns[i] - 1)
            w = w - (self.conv_kerns[i] - 1)
            h = (h - (self.pool_kerns[i] - 1) - 1) // self.pool_strides[i] + 1
            w = (w - (self.pool_kerns[i] - 1) - 1) // self.pool_strides[i] + 1
        return (h, w)

    def __call__(self, x):
        B, C, H, W = x.shape
        xs = jnp.transpose(x, (0, 2, 3, 1))      # single tiny NCHW->NHWC
        for i in range(self.num_layers - 1):
            w, b = self.conv_params[i]
            xs = conv_pool_relu_stage(xs, w, b, self.pool_kerns[i],
                                      self.pool_strides[i])
        w, b = self.conv_params[-1]
        theta = conv_pool_fc_stage(xs, w, b, self.pool_kerns[-1],
                                   self.pool_strides[-1],
                                   self.fc1_w_stacked, self.fc1_b,
                                   self.fc2_wT, self.fc2_b)
        theta = theta.reshape(B, 2, 3)
        samp_grid = affine_grid(theta, H, W)
        k_t = bilinear_weight_matrix(samp_grid, H, W)
        x_out = grid_sample_matmul(x, k_t)
        return lax.stop_gradient(theta), x_out   # (theta.detach(), x)


if __name__ == "__main__":
    key = jax.random.PRNGKey(0)
    kx, kp = jax.random.split(key)
    model = STNPallas(
        kp,
        im_shape=(16, 16),
        n_channels=4,
        conv_out_channels=[32, 128],
        conv_kerns=[3, 3],
        pool_kerns=[2, 2],
        pool_strides=[2, 2],
    )
    x = jax.random.normal(kx, (2, 4, 16, 16), dtype=jnp.float32)
    fwd = jax.jit(lambda xx: model(xx))
    theta, out = fwd(x)
    jax.block_until_ready((theta, out))
    assert theta.shape == (2, 2, 3)
    assert out.shape == (2, 4, 16, 16)
    print("KERNEL_OK")
</pallas_src>

<mosaic_0001>
module attributes {stable_mosaic.version = 11 : i64} {
  func.func @_conv_pool_kernel(%arg0: i32, %arg1: memref<1x4x49x36xf32, #tpu.memory_space<vmem>>, %arg2: memref<36x32xf32, #tpu.memory_space<vmem>>, %arg3: memref<1x32xf32, #tpu.memory_space<vmem>>, %arg4: memref<1x49x32xf32, #tpu.memory_space<vmem>>) attributes {dimension_semantics = [#tpu.dimension_semantics<parallel>], iteration_bounds = array<i64: 2>, scalar_prefetch = 0 : i64, scratch_operands = 0 : i64, tpu.core_type = #tpu.core_type<tc>, window_params = [{transform_indices = @transform_0, window_bounds = array<i64: 1, 4, 49, 36>}, {pipeline_mode = #tpu.pipeline_mode<synchronous>, transform_indices = @transform_1, window_bounds = array<i64: 36, 32>}, {pipeline_mode = #tpu.pipeline_mode<synchronous>, transform_indices = @transform_2, window_bounds = array<i64: 1, 32>}, {transform_indices = @transform_3, window_bounds = array<i64: 1, 49, 32>}]} {
    %c0 = arith.constant 0 : index
    %c0_0 = arith.constant 0 : index
    %0 = vector.load %arg2[%c0, %c0_0] : memref<36x32xf32, #tpu.memory_space<vmem>>, vector<36x32xf32>
    %c0_1 = arith.constant 0 : index
    %c0_2 = arith.constant 0 : index
    %c0_3 = arith.constant 0 : index
    %c0_4 = arith.constant 0 : index
    %1 = vector.load %arg1[%c0_1, %c0_2, %c0_3, %c0_4] : memref<1x4x49x36xf32, #tpu.memory_space<vmem>>, vector<1x1x49x36xf32>
    %2 = vector.shape_cast %1 : vector<1x1x49x36xf32> to vector<49x36xf32>
    %cst = arith.constant dense<0.000000e+00> : vector<49x32xf32>
    %3 = tpu.matmul %2, %0, %cst {dimension_numbers = #tpu.dot_dimension_numbers<[1], [0], [0], [1], [0, 0, 1, 1], [], []>} : vector<49x36xf32>, vector<36x32xf32>, vector<49x32xf32> -> vector<49x32xf32>
    %c0_5 = arith.constant 0 : index
    %c1 = arith.constant 1 : index
    %c0_6 = arith.constant 0 : index
    %c0_7 = arith.constant 0 : index
    %4 = vector.load %arg1[%c0_5, %c1, %c0_6, %c0_7] : memref<1x4x49x36xf32, #tpu.memory_space<vmem>>, vector<1x1x49x36xf32>
    %5 = vector.shape_cast %4 : vector<1x1x49x36xf32> to vector<49x36xf32>
    %cst_8 = arith.constant dense<0.000000e+00> : vector<49x32xf32>
    %6 = tpu.matmul %5, %0, %cst_8 {dimension_numbers = #tpu.dot_dimension_numbers<[1], [0], [0], [1], [0, 0, 1, 1], [], []>} : vector<49x36xf32>, vector<36x32xf32>, vector<49x32xf32> -> vector<49x32xf32>
    %7 = arith.maximumf %3, %6 : vector<49x32xf32>
    %c0_9 = arith.constant 0 : index
    %c2 = arith.constant 2 : index
    %c0_10 = arith.constant 0 : index
    %c0_11 = arith.constant 0 : index
    %8 = vector.load %arg1[%c0_9, %c2, %c0_10, %c0_11] : memref<1x4x49x36xf32, #tpu.memory_space<vmem>>, vector<1x1x49x36xf32>
    %9 = vector.shape_cast %8 : vector<1x1x49x36xf32> to vector<49x36xf32>
    %cst_12 = arith.constant dense<0.000000e+00> : vector<49x32xf32>
    %10 = tpu.matmul %9, %0, %cst_12 {dimension_numbers = #tpu.dot_dimension_numbers<[1], [0], [0], [1], [0, 0, 1, 1], [], []>} : vector<49x36xf32>, vector<36x32xf32>, vector<49x32xf32> -> vector<49x32xf32>
    %11 = arith.maximumf %7, %10 : vector<49x32xf32>
    %c0_13 = arith.constant 0 : index
    %c3 = arith.constant 3 : index
    %c0_14 = arith.constant 0 : index
    %c0_15 = arith.constant 0 : index
    %12 = vector.load %arg1[%c0_13, %c3, %c0_14, %c0_15] : memref<1x4x49x36xf32, #tpu.memory_space<vmem>>, vector<1x1x49x36xf32>
    %13 = vector.shape_cast %12 : vector<1x1x49x36xf32> to vector<49x36xf32>
    %cst_16 = arith.constant dense<0.000000e+00> : vector<49x32xf32>
    %14 = tpu.matmul %13, %0, %cst_16 {dimension_numbers = #tpu.dot_dimension_numbers<[1], [0], [0], [1], [0, 0, 1, 1], [], []>} : vector<49x36xf32>, vector<36x32xf32>, vector<49x32xf32> -> vector<49x32xf32>
    %15 = arith.maximumf %11, %14 : vector<49x32xf32>
    %c0_17 = arith.constant 0 : index
    %c0_18 = arith.constant 0 : index
    %16 = vector.load %arg3[%c0_17, %c0_18] : memref<1x32xf32, #tpu.memory_space<vmem>>, vector<1x32xf32>
    %17 = vector.broadcast %16 : vector<1x32xf32> to vector<49x32xf32>
    %18 = arith.addf %15, %17 : vector<49x32xf32>
    %cst_19 = arith.constant 0.000000e+00 : f32
    %19 = vector.broadcast %cst_19 : f32 to vector<49x32xf32>
    %20 = arith.maximumf %18, %19 : vector<49x32xf32>
    %c0_20 = arith.constant 0 : index
    %c0_21 = arith.constant 0 : index
    %c0_22 = arith.constant 0 : index
    %21 = vector.load %arg4[%c0_20, %c0_21, %c0_22] : memref<1x49x32xf32, #tpu.memory_space<vmem>>, vector<1x49x32xf32>
    %22 = vector.shape_cast %21 : vector<1x49x32xf32> to vector<49x32xf32>
    %23 = vector.shape_cast %20 : vector<49x32xf32> to vector<1x49x32xf32>
    tpu.vector_store %arg4[%c0_20, %c0_21, %c0_22], %23 {strides = array<i32>} : memref<1x49x32xf32, #tpu.memory_space<vmem>>, vector<1x49x32xf32>,
    return
  }
  func.func @transform_0(%arg0: i32) -> (i32, i32, i32, i32) {
    %c0_i32 = arith.constant 0 : i32
    %c0_i32_0 = arith.constant 0 : i32
    %c0_i32_1 = arith.constant 0 : i32
    %c0_i32_2 = arith.constant 0 : i32
    return %arg0, %c0_i32, %c0_i32_0, %c0_i32_1 : i32, i32, i32, i32
  }
  func.func @transform_1(%arg0: i32) -> (i32, i32) {
    %c0_i32 = arith.constant 0 : i32
    %c0_i32_0 = arith.constant 0 : i32
    %c0_i32_1 = arith.constant 0 : i32
    return %c0_i32, %c0_i32_0 : i32, i32
  }
  func.func @transform_2(%arg0: i32) -> (i32, i32) {
    %c0_i32 = arith.constant 0 : i32
    %c0_i32_0 = arith.constant 0 : i32
    %c0_i32_1 = arith.constant 0 : i32
    return %c0_i32, %c0_i32_0 : i32, i32
  }
  func.func @transform_3(%arg0: i32) -> (i32, i32, i32) {
    %c0_i32 = arith.constant 0 : i32
    %c0_i32_0 = arith.constant 0 : i32
    %c0_i32_1 = arith.constant 0 : i32
    return %arg0, %c0_i32, %c0_i32_0 : i32, i32, i32
  }
}

module attributes {stable_mosaic.version = 11 : i64} {
  func.func @_conv_pool_fc_kernel(%arg0: i32, %arg1: memref<1x4x4x288xf32, #tpu.memory_space<vmem>>, %arg2: memref<288x128xf32, #tpu.memory_space<vmem>>, %arg3: memref<1x128xf32, #tpu.memory_space<vmem>>, %arg4: memref<4x128x256xf32, #tpu.memory_space<vmem>>, %arg5: memref<1x256xf32, #tpu.memory_space<vmem>>, %arg6: memref<256x6xf32, #tpu.memory_space<vmem>>, %arg7: memref<1x6xf32, #tpu.memory_space<vmem>>, %arg8: memref<1x1x6xf32, #tpu.memory_space<vmem>>) attributes {dimension_semantics = [#tpu.dimension_semantics<parallel>], iteration_bounds = array<i64: 2>, scalar_prefetch = 0 : i64, scratch_operands = 0 : i64, tpu.core_type = #tpu.core_type<tc>, window_params = [{transform_indices = @transform_0, window_bounds = array<i64: 1, 4, 4, 288>}, {pipeline_mode = #tpu.pipeline_mode<synchronous>, transform_indices = @transform_1, window_bounds = array<i64: 288, 128>}, {pipeline_mode = #tpu.pipeline_mode<synchronous>, transform_indices = @transform_2, window_bounds = array<i64: 1, 128>}, {pipeline_mode = #tpu.pipeline_mode<synchronous>, transform_indices = @transform_3, window_bounds = array<i64: 4, 128, 256>}, {pipeline_mode = #tpu.pipeline_mode<synchronous>, transform_indices = @transform_4, window_bounds = array<i64: 1, 256>}, {pipeline_mode = #tpu.pipeline_mode<synchronous>, transform_indices = @transform_5, window_bounds = array<i64: 256, 6>}, {pipeline_mode = #tpu.pipeline_mode<synchronous>, transform_indices = @transform_6, window_bounds = array<i64: 1, 6>}, {transform_indices = @transform_7, window_bounds = array<i64: 1, 1, 6>}]} {
    %c0 = arith.constant 0 : index
    %c0_0 = arith.constant 0 : index
    %0 = vector.load %arg2[%c0, %c0_0] : memref<288x128xf32, #tpu.memory_space<vmem>>, vector<288x128xf32>
    %c0_1 = arith.constant 0 : index
    %c0_2 = arith.constant 0 : index
    %c0_3 = arith.constant 0 : index
    %c0_4 = arith.constant 0 : index
    %1 = vector.load %arg1[%c0_1, %c0_2, %c0_3, %c0_4] : memref<1x4x4x288xf32, #tpu.memory_space<vmem>>, vector<1x1x4x288xf32>
    %2 = vector.shape_cast %1 : vector<1x1x4x288xf32> to vector<4x288xf32>
    %cst = arith.constant dense<0.000000e+00> : vector<4x128xf32>
    %3 = tpu.matmul %2, %0, %cst {dimension_numbers = #tpu.dot_dimension_numbers<[1], [0], [0], [1], [0, 0, 1, 1], [], []>} : vector<4x288xf32>, vector<288x128xf32>, vector<4x128xf32> -> vector<4x128xf32>
    %c0_5 = arith.constant 0 : index
    %c1 = arith.constant 1 : index
    %c0_6 = arith.constant 0 : index
    %c0_7 = arith.constant 0 : index
    %4 = vector.load %arg1[%c0_5, %c1, %c0_6, %c0_7] : memref<1x4x4x288xf32, #tpu.memory_space<vmem>>, vector<1x1x4x288xf32>
    %5 = vector.shape_cast %4 : vector<1x1x4x288xf32> to vector<4x288xf32>
    %cst_8 = arith.constant dense<0.000000e+00> : vector<4x128xf32>
    %6 = tpu.matmul %5, %0, %cst_8 {dimension_numbers = #tpu.dot_dimension_numbers<[1], [0], [0], [1], [0, 0, 1, 1], [], []>} : vector<4x288xf32>, vector<288x128xf32>, vector<4x128xf32> -> vector<4x128xf32>
    %7 = arith.maximumf %3, %6 : vector<4x128xf32>
    %c0_9 = arith.constant 0 : index
    %c2 = arith.constant 2 : index
    %c0_10 = arith.constant 0 : index
    %c0_11 = arith.constant 0 : index
    %8 = vector.load %arg1[%c0_9, %c2, %c0_10, %c0_11] : memref<1x4x4x288xf32, #tpu.memory_space<vmem>>, vector<1x1x4x288xf32>
    %9 = vector.shape_cast %8 : vector<1x1x4x288xf32> to vector<4x288xf32>
    %cst_12 = arith.constant dense<0.000000e+00> : vector<4x128xf32>
    %10 = tpu.matmul %9, %0, %cst_12 {dimension_numbers = #tpu.dot_dimension_numbers<[1], [0], [0], [1], [0, 0, 1, 1], [], []>} : vector<4x288xf32>, vector<288x128xf32>, vector<4x128xf32> -> vector<4x128xf32>
    %11 = arith.maximumf %7, %10 : vector<4x128xf32>
    %c0_13 = arith.constant 0 : index
    %c3 = arith.constant 3 : index
    %c0_14 = arith.constant 0 : index
    %c0_15 = arith.constant 0 : index
    %12 = vector.load %arg1[%c0_13, %c3, %c0_14, %c0_15] : memref<1x4x4x288xf32, #tpu.memory_space<vmem>>, vector<1x1x4x288xf32>
    %13 = vector.shape_cast %12 : vector<1x1x4x288xf32> to vector<4x288xf32>
    %cst_16 = arith.constant dense<0.000000e+00> : vector<4x128xf32>
    %14 = tpu.matmul %13, %0, %cst_16 {dimension_numbers = #tpu.dot_dimension_numbers<[1], [0], [0], [1], [0, 0, 1, 1], [], []>} : vector<4x288xf32>, vector<288x128xf32>, vector<4x128xf32> -> vector<4x128xf32>
    %15 = arith.maximumf %11, %14 : vector<4x128xf32>
    %c0_17 = arith.constant 0 : index
    %c0_18 = arith.constant 0 : index
    %16 = vector.load %arg3[%c0_17, %c0_18] : memref<1x128xf32, #tpu.memory_space<vmem>>, vector<1x128xf32>
    %17 = vector.broadcast %16 : vector<1x128xf32> to vector<4x128xf32>
    %18 = arith.addf %15, %17 : vector<4x128xf32>
    %cst_19 = arith.constant 0.000000e+00 : f32
    %19 = vector.broadcast %cst_19 : f32 to vector<4x128xf32>
    %20 = arith.maximumf %18, %19 : vector<4x128xf32>
    %c0_20 = arith.constant 0 : index
    %c0_21 = arith.constant 0 : index
    %21 = vector.load %arg5[%c0_20, %c0_21] : memref<1x256xf32, #tpu.memory_space<vmem>>, vector<1x256xf32>
    %22 = vector.extract_strided_slice %20 {offsets = [0, 0], sizes = [1, 128], strides = [1, 1]} : vector<4x128xf32> to vector<1x128xf32>
    %c0_22 = arith.constant 0 : index
    %c0_23 = arith.constant 0 : index
    %c0_24 = arith.constant 0 : index
    %23 = vector.load %arg4[%c0_22, %c0_23, %c0_24] : memref<4x128x256xf32, #tpu.memory_space<vmem>>, vector<1x128x256xf32>
    %24 = vector.shape_cast %23 : vector<1x128x256xf32> to vector<128x256xf32>
    %cst_25 = arith.constant dense<0.000000e+00> : vector<1x256xf32>
    %25 = tpu.matmul %22, %24, %cst_25 {dimension_numbers = #tpu.dot_dimension_numbers<[1], [0], [0], [1], [0, 0, 1, 1], [], []>} : vector<1x128xf32>, vector<128x256xf32>, vector<1x256xf32> -> vector<1x256xf32>
    %26 = arith.addf %21, %25 : vector<1x256xf32>
    %27 = vector.extract_strided_slice %20 {offsets = [1, 0], sizes = [1, 128], strides = [1, 1]} : vector<4x128xf32> to vector<1x128xf32>
    %c1_26 = arith.constant 1 : index
    %c0_27 = arith.constant 0 : index
    %c0_28 = arith.constant 0 : index
    %28 = vector.load %arg4[%c1_26, %c0_27, %c0_28] : memref<4x128x256xf32, #tpu.memory_space<vmem>>, vector<1x128x256xf32>
    %29 = vector.shape_cast %28 : vector<1x128x256xf32> to vector<128x256xf32>
    %cst_29 = arith.constant dense<0.000000e+00> : vector<1x256xf32>
    %30 = tpu.matmul %27, %29, %cst_29 {dimension_numbers = #tpu.dot_dimension_numbers<[1], [0], [0], [1], [0, 0, 1, 1], [], []>} : vector<1x128xf32>, vector<128x256xf32>, vector<1x256xf32> -> vector<1x256xf32>
    %31 = arith.addf %26, %30 : vector<1x256xf32>
    %32 = vector.extract_strided_slice %20 {offsets = [2, 0], sizes = [1, 128], strides = [1, 1]} : vector<4x128xf32> to vector<1x128xf32>
    %c2_30 = arith.constant 2 : index
    %c0_31 = arith.constant 0 : index
    %c0_32 = arith.constant 0 : index
    %33 = vector.load %arg4[%c2_30, %c0_31, %c0_32] : memref<4x128x256xf32, #tpu.memory_space<vmem>>, vector<1x128x256xf32>
    %34 = vector.shape_cast %33 : vector<1x128x256xf32> to vector<128x256xf32>
    %cst_33 = arith.constant dense<0.000000e+00> : vector<1x256xf32>
    %35 = tpu.matmul %32, %34, %cst_33 {dimension_numbers = #tpu.dot_dimension_numbers<[1], [0], [0], [1], [0, 0, 1, 1], [], []>} : vector<1x128xf32>, vector<128x256xf32>, vector<1x256xf32> -> vector<1x256xf32>
    %36 = arith.addf %31, %35 : vector<1x256xf32>
    %37 = vector.extract_strided_slice %20 {offsets = [3, 0], sizes = [1, 128], strides = [1, 1]} : vector<4x128xf32> to vector<1x128xf32>
    %c3_34 = arith.constant 3 : index
    %c0_35 = arith.constant 0 : index
    %c0_36 = arith.constant 0 : index
    %38 = vector.load %arg4[%c3_34, %c0_35, %c0_36] : memref<4x128x256xf32, #tpu.memory_space<vmem>>, vector<1x128x256xf32>
    %39 = vector.shape_cast %38 : vector<1x128x256xf32> to vector<128x256xf32>
    %cst_37 = arith.constant dense<0.000000e+00> : vector<1x256xf32>
    %40 = tpu.matmul %37, %39, %cst_37 {dimension_numbers = #tpu.dot_dimension_numbers<[1], [0], [0], [1], [0, 0, 1, 1], [], []>} : vector<1x128xf32>, vector<128x256xf32>, vector<1x256xf32> -> vector<1x256xf32>
    %41 = arith.addf %36, %40 : vector<1x256xf32>
    %cst_38 = arith.constant 0.000000e+00 : f32
    %42 = vector.broadcast %cst_38 : f32 to vector<1x256xf32>
    %43 = arith.maximumf %41, %42 : vector<1x256xf32>
    %c0_39 = arith.constant 0 : index
    %c0_40 = arith.constant 0 : index
    %44 = vector.load %arg6[%c0_39, %c0_40] : memref<256x6xf32, #tpu.memory_space<vmem>>, vector<256x6xf32>
    %cst_41 = arith.constant dense<0.000000e+00> : vector<1x6xf32>
    %45 = tpu.matmul %43, %44, %cst_41 {dimension_numbers = #tpu.dot_dimension_numbers<[1], [0], [0], [1], [0, 0, 1, 1], [], []>} : vector<1x256xf32>, vector<256x6xf32>, vector<1x6xf32> -> vector<1x6xf32>
    %c0_42 = arith.constant 0 : index
    %c0_43 = arith.constant 0 : index
    %46 = vector.load %arg7[%c0_42, %c0_43] : memref<1x6xf32, #tpu.memory_space<vmem>>, vector<1x6xf32>
    %47 = arith.addf %45, %46 : vector<1x6xf32>
    %c0_44 = arith.constant 0 : index
    %c0_45 = arith.constant 0 : index
    %c0_46 = arith.constant 0 : index
    %48 = vector.load %arg8[%c0_44, %c0_45, %c0_46] : memref<1x1x6xf32, #tpu.memory_space<vmem>>, vector<1x1x6xf32>
    %49 = vector.shape_cast %48 : vector<1x1x6xf32> to vector<1x6xf32>
    %50 = vector.shape_cast %47 : vector<1x6xf32> to vector<1x1x6xf32>
    tpu.vector_store %arg8[%c0_44, %c0_45, %c0_46], %50 {strides = array<i32>} : memref<1x1x6xf32, #tpu.memory_space<vmem>>, vector<1x1x6xf32>,
    return
  }
  func.func @transform_0(%arg0: i32) -> (i32, i32, i32, i32) {
    %c0_i32 = arith.constant 0 : i32
    %c0_i32_0 = arith.constant 0 : i32
    %c0_i32_1 = arith.constant 0 : i32
    %c0_i32_2 = arith.constant 0 : i32
    return %arg0, %c0_i32, %c0_i32_0, %c0_i32_1 : i32, i32, i32, i32
  }
  func.func @transform_1(%arg0: i32) -> (i32, i32) {
    %c0_i32 = arith.constant 0 : i32
    %c0_i32_0 = arith.constant 0 : i32
    %c0_i32_1 = arith.constant 0 : i32
    return %c0_i32, %c0_i32_0 : i32, i32
  }
  func.func @transform_2(%arg0: i32) -> (i32, i32) {
    %c0_i32 = arith.constant 0 : i32
    %c0_i32_0 = arith.constant 0 : i32
    %c0_i32_1 = arith.constant 0 : i32
    return %c0_i32, %c0_i32_0 : i32, i32
  }
  func.func @transform_3(%arg0: i32) -> (i32, i32, i32) {
    %c0_i32 = arith.constant 0 : i32
    %c0_i32_0 = arith.constant 0 : i32
    %c0_i32_1 = arith.constant 0 : i32
    %c0_i32_2 = arith.constant 0 : i32
    return %c0_i32, %c0_i32_0, %c0_i32_1 : i32, i32, i32
  }
  func.func @transform_4(%arg0: i32) -> (i32, i32) {
    %c0_i32 = arith.constant 0 : i32
    %c0_i32_0 = arith.constant 0 : i32
    %c0_i32_1 = arith.constant 0 : i32
    return %c0_i32, %c0_i32_0 : i32, i32
  }
  func.func @transform_5(%arg0: i32) -> (i32, i32) {
    %c0_i32 = arith.constant 0 : i32
    %c0_i32_0 = arith.constant 0 : i32
    %c0_i32_1 = arith.constant 0 : i32
    return %c0_i32, %c0_i32_0 : i32, i32
  }
  func.func @transform_6(%arg0: i32) -> (i32, i32) {
    %c0_i32 = arith.constant 0 : i32
    %c0_i32_0 = arith.constant 0 : i32
    %c0_i32_1 = arith.constant 0 : i32
    return %c0_i32, %c0_i32_0 : i32, i32
  }
  func.func @transform_7(%arg0: i32) -> (i32, i32, i32) {
    %c0_i32 = arith.constant 0 : i32
    %c0_i32_0 = arith.constant 0 : i32
    %c0_i32_1 = arith.constant 0 : i32
    return %arg0, %c0_i32, %c0_i32_0 : i32, i32, i32
  }
}

module attributes {stable_mosaic.version = 11 : i64} {
  func.func @_sample_kernel(%arg0: i32, %arg1: memref<1x4x256xf32, #tpu.memory_space<vmem>>, %arg2: memref<1x256x256xf32, #tpu.memory_space<vmem>>, %arg3: memref<1x4x256xf32, #tpu.memory_space<vmem>>) attributes {dimension_semantics = [#tpu.dimension_semantics<parallel>], iteration_bounds = array<i64: 2>, scalar_prefetch = 0 : i64, scratch_operands = 0 : i64, tpu.core_type = #tpu.core_type<tc>, window_params = [{transform_indices = @transform_0, window_bounds = array<i64: 1, 4, 256>}, {transform_indices = @transform_1, window_bounds = array<i64: 1, 256, 256>}, {transform_indices = @transform_2, window_bounds = array<i64: 1, 4, 256>}]} {
    %c0 = arith.constant 0 : index
    %c0_0 = arith.constant 0 : index
    %c0_1 = arith.constant 0 : index
    %0 = vector.load %arg1[%c0, %c0_0, %c0_1] : memref<1x4x256xf32, #tpu.memory_space<vmem>>, vector<1x4x256xf32>
    %1 = vector.shape_cast %0 : vector<1x4x256xf32> to vector<4x256xf32>
    %c0_2 = arith.constant 0 : index
    %c0_3 = arith.constant 0 : index
    %c0_4 = arith.constant 0 : index
    %2 = vector.load %arg2[%c0_2, %c0_3, %c0_4] : memref<1x256x256xf32, #tpu.memory_space<vmem>>, vector<1x256x256xf32>
    %3 = vector.shape_cast %2 : vector<1x256x256xf32> to vector<256x256xf32>
    %cst = arith.constant dense<0.000000e+00> : vector<4x256xf32>
    %4 = tpu.matmul %1, %3, %cst {dimension_numbers = #tpu.dot_dimension_numbers<[1], [0], [0], [1], [0, 0, 1, 1], [], []>} : vector<4x256xf32>, vector<256x256xf32>, vector<4x256xf32> -> vector<4x256xf32>
    %c0_5 = arith.constant 0 : index
    %c0_6 = arith.constant 0 : index
    %c0_7 = arith.constant 0 : index
    %5 = vector.load %arg3[%c0_5, %c0_6, %c0_7] : memref<1x4x256xf32, #tpu.memory_space<vmem>>, vector<1x4x256xf32>
    %6 = vector.shape_cast %5 : vector<1x4x256xf32> to vector<4x256xf32>
    %7 = vector.shape_cast %4 : vector<4x256xf32> to vector<1x4x256xf32>
    tpu.vector_store %arg3[%c0_5, %c0_6, %c0_7], %7 {strides = array<i32>} : memref<1x4x256xf32, #tpu.memory_space<vmem>>, vector<1x4x256xf32>,
    return
  }
  func.func @transform_0(%arg0: i32) -> (i32, i32, i32) {
    %c0_i32 = arith.constant 0 : i32
    %c0_i32_0 = arith.constant 0 : i32
    %c0_i32_1 = arith.constant 0 : i32
    return %arg0, %c0_i32, %c0_i32_0 : i32, i32, i32
  }
  func.func @transform_1(%arg0: i32) -> (i32, i32, i32) {
    %c0_i32 = arith.constant 0 : i32
    %c0_i32_0 = arith.constant 0 : i32
    %c0_i32_1 = arith.constant 0 : i32
    return %arg0, %c0_i32, %c0_i32_0 : i32, i32, i32
  }
  func.func @transform_2(%arg0: i32) -> (i32, i32, i32) {
    %c0_i32 = arith.constant 0 : i32
    %c0_i32_0 = arith.constant 0 : i32
    %c0_i32_1 = arith.constant 0 : i32
    return %arg0, %c0_i32, %c0_i32_0 : i32, i32, i32
  }
}

</mosaic_0001>

<bundles_post_ra>
// kernel: _lambda_.3
= control target key start
LH: loop header
LB: loop body
LE: loop exit
PB: predicated region body
PF: predicated region fallthrough
CT: control target
= control target key end

     0   :  { %s1105_s12 = smov 0   ;;  %s1284_s0 = inlined_call_operand.vmem [shape: f32[2,4,49,36], index: 0, kind: input, shape index: {}]   ;;  %s1285_s1 = inlined_call_operand.vmem [shape: f32[36,32], index: 1, kind: input, shape index: {}]   ;;  %s1286_s2 = inlined_call_operand.vmem [shape: f32[1,32], index: 2, kind: input, shape index: {}]   ;;  %s1287_s3 = inlined_call_operand.vmem [shape: f32[2,49,32], index: 3, kind: output, shape index: {}]  }
   0x1 LB: > { %s802_s13 = sadd.s32 4294967295, %s1080_s12   ;;  %p806_p0 = scmp.ge.s32.totalorder %s1080_s12, 1  ;;  %s1080_s12 = sphi %s1105_s12, %s13_s12  }
   0x2   : > { %p137_p1 = scmp.lt.s32.totalorder %s1080_s12, 3 }
   0x4   : > { %p138_p2 = pnand %p806_p0, %p137_p1 }
   0x5   : > { %v171_v0 = vld [vmem:[%s1285_s1] sm:$0xff] (!%p138_p2)  ;;  %v172_v1 = vld [vmem:[%s1285_s1 + $0x8] sm:$0xff] (!%p138_p2)  ;;  %v173_v2 = vld [vmem:[%s1285_s1 + $0x10] sm:$0xff] (!%p138_p2)  ;;  %v1082_v3 = vmov (!%p138_p2), 0.0|0.0   ;;  %p161_p3 = scmp.lt.s32.totalorder (!%p138_p2), %s802_s13, 1  ;;  %vm1083_vm0 = vmmov (!%p138_p2), 0  }
   0x6   : > { %141 = sbr.rel (%p138_p2) target bundleno = 291 (0x123), region = 32  ;;  %1037 = vmatprep.subr.bf16.mxu0 (!%p138_p2), %v1082_v3  ;;  %v1038_v4 = vpack.c.bf16 (!%p138_p2), %v172_v1, %v171_v0  ;;  %1043 = vmatprep.subr.bf16.mxu1 (!%p138_p2), %v1082_v3  ;;  %v174_v5 = vld [vmem:[%s1285_s1 + $0x18] sm:$0xff] (!%p138_p2)  ;;  %v1084_v6 = vmov (!%p138_p2), 0.0   ;;  %v175_v8 = vld [vmem:[%s1285_s1 + $0x20] sm:$0xf] (!%p138_p2)  ;;  %vm205_vm1 = vcmask (!%p138_p2), 1043456  }
   0x7   : > { %923 = vmatprep.mubr.msk.f32.mxu0 (!%p138_p2), %vm1083_vm0, %v1084_v6  ;;  %954 = vmatprep.mubr.msk.f32.mxu1 (!%p138_p2), %vm1083_vm0, %v1084_v6  ;;  %v1041_v7 = vpack.c.bf16 (!%p138_p2), %v174_v5, %v173_v2  ;;  %vm183_vm2 = vcmask (!%p138_p2), 293888   ;;  %vm738_vm3 = vcmask (!%p138_p2), 261120   ;;  %vm745_vm4 = vcmask (!%p138_p2), 253952  }
   0x8   : > { %1039 = vmatpush3.bf16.msra.mxu0 (!%p138_p2), %v1038_v4  ;;  %1045 = vmatpush3.bf16.msra.mxu1 (!%p138_p2), %v1038_v4 }
   0x9   : > { %1040 = vmatprep.subr.bf16.mxu0 (!%p138_p2), %v1082_v3  ;;  %1046 = vmatprep.subr.bf16.mxu1 (!%p138_p2), %v1082_v3 }
   0xc   : > { %1042 = vmatpush3.bf16.msra.mxu0 (!%p138_p2), %v1041_v7  ;;  %1048 = vmatpush3.bf16.msra.mxu1 (!%p138_p2), %v1041_v7 }
   0xd   : > { %s1289_s13 = smov (!%p161_p3, %s802_s13), 1  ;;  %921 = vmatprep.subr.mxu0 %v1084_v6  ;;  %952 = vmatprep.subr.mxu1 %v1084_v6 }
   0xe   : > { %s1061_s22 = smul.u32 224, %s1289_s13 }
   0xf   : > { %s1062_s28 = smul.u32 56, %s1289_s13 }
  0x10   : > { %s1135_s25 = scalar_lea.vmem %s1284_s0, %s1061_s22  ;;  %922 = vmatpush3.msk.msra.mxu0 %vm205_vm1, %v175_v8  ;;  %953 = vmatpush3.msk.msra.mxu1 %vm205_vm1, %v175_v8 }
  0x11   : > { %v176_v9 = vld [vmem:[%s1135_s25] sm:$0xff]  ;;  %v817_v10 = vld [vmem:[%s1135_s25 + $0x38] sm:$0xff]  ;;  %1049 = vmatprep.subr.bf16.mxu0 %v1082_v3  ;;  %v177_v11 = vld [vmem:[%s1135_s25 + $0x8] sm:$0xff]  ;;  %1055 = vmatprep.subr.bf16.mxu1 %v1082_v3  ;;  %s1266_s6 = scalar_lea.vmem %s1287_s3, %s1062_s28 }
  0x12   : > { %924 = vmatmul.mubr.msk.f32.vlgmr.msra.gmra.mrb[0].mxu0 %vm183_vm2, %v176_v9  ;;  %955 = vmatmul.mubr.msk.f32.vlgmr.msra.gmra.mrb[0].mxu1 %vm183_vm2, %v817_v10  ;;  %v818_v12 = vld [vmem:[%s1135_s25 + $0x40] sm:$0xff]  ;;  %v178_v13 = vld [vmem:[%s1135_s25 + $0x10] sm:$0xff]  ;;  %v819_v14 = vld [vmem:[%s1135_s25 + $0x48] sm:$0xff] }
  0x13   : > { %1051 = vmatpush3.bf16.msra.mxu0 %v1038_v4  ;;  %926 = vmatprep.mubr.msk.f32.mxu0 %vm1083_vm0, %v1084_v6  ;;  %v179_v15 = vld [vmem:[%s1135_s25 + $0x18] sm:$0xff]  ;;  %v820_v16 = vld [vmem:[%s1135_s25 + $0x50] sm:$0xff]  ;;  %v180_v17 = vld [vmem:[%s1135_s25 + $0x20] sm:$0xff] }
  0x14   : > { %1057 = vmatpush3.bf16.msra.mxu1 %v1038_v4  ;;  %957 = vmatprep.mubr.msk.f32.mxu1 %vm1083_vm0, %v1084_v6  ;;  %v821_v18 = vld [vmem:[%s1135_s25 + $0x58] sm:$0xff]  ;;  %v181_v19 = vld [vmem:[%s1135_s25 + $0x28] sm:$0xff]  ;;  %v822_v20 = vld [vmem:[%s1135_s25 + $0x60] sm:$0xff] }
  0x15   : > { %1052 = vmatprep.subr.bf16.mxu0 %v1082_v3  ;;  %1058 = vmatprep.subr.bf16.mxu1 %v1082_v3  ;;  %v182_v21 = vld [vmem:[%s1135_s25 + $0x30] sm:$0x1]  ;;  %v823_v22 = vld [vmem:[%s1135_s25 + $0x68] sm:$0x1]  ;;  %v833_v25 = vld [vmem:[%s1135_s25 + $0x78] sm:$0xff] }
  0x16   : > { %927 = vmatmul.mubr.msk.f32.gmra.mrb[2].mxu0 %vm183_vm2, %v177_v11  ;;  %958 = vmatmul.mubr.msk.f32.gmra.mrb[2].mxu1 %vm183_vm2, %v818_v12  ;;  %v832_v23 = vld [vmem:[%s1135_s25 + $0x70] sm:$0xff]  ;;  %v847_v24 = vld [vmem:[%s1135_s25 + $0xa8] sm:$0xff]  ;;  %v834_v27 = vld [vmem:[%s1135_s25 + $0x80] sm:$0xff] }
  0x17   : > { %929 = vmatprep.mubr.msk.f32.mxu0 %vm1083_vm0, %v1084_v6  ;;  %960 = vmatprep.mubr.msk.f32.mxu1 %vm1083_vm0, %v1084_v6  ;;  %v848_v26 = vld [vmem:[%s1135_s25 + $0xb0] sm:$0xff]  ;;  %v849_v28 = vld [vmem:[%s1135_s25 + $0xb8] sm:$0xff]  ;;  %v835_v29 = vld [vmem:[%s1135_s25 + $0x88] sm:$0xff] }
  0x18   : > { %1054 = vmatpush3.bf16.msra.mxu0 %v1041_v7  ;;  %1060 = vmatpush3.bf16.msra.mxu1 %v1041_v7  ;;  %v850_v30 = vld [vmem:[%s1135_s25 + $0xc0] sm:$0xff]  ;;  %v836_v31 = vld [vmem:[%s1135_s25 + $0x90] sm:$0xff]  ;;  %v851_v32 = vld [vmem:[%s1135_s25 + $0xc8] sm:$0xff] }
  0x19   : > { %983 = vmatprep.subr.mxu0 %v1084_v6  ;;  %1014 = vmatprep.subr.mxu1 %v1084_v6  ;;  %v837_v33 = vld [vmem:[%s1135_s25 + $0x98] sm:$0xff]  ;;  %v852_v34 = vld [vmem:[%s1135_s25 + $0xd0] sm:$0xff]  ;;  %v838_v35 = vld [vmem:[%s1135_s25 + $0xa0] sm:$0x1] }
  0x1a   : > { %930 = vmatmul.mubr.msk.f32.gmra.mrb[4].mxu0 %vm183_vm2, %v178_v13  ;;  %961 = vmatmul.mubr.msk.f32.gmra.mrb[4].mxu1 %vm183_vm2, %v819_v14  ;;  %v853_v36 = vld [vmem:[%s1135_s25 + $0xd8] sm:$0x1]  ;;  %v862_v12 = vld [vmem:[%s1286_s2] ss:$0 sm:$0xff] }
  0x1b   : > { %932 = vmatprep.mubr.msk.f32.mxu0 %vm1083_vm0, %v1084_v6  ;;  %963 = vmatprep.mubr.msk.f32.mxu1 %vm1083_vm0, %v1084_v6 }
  0x1c   : > { %984 = vmatpush3.msk.msra.mxu0 %vm205_vm1, %v175_v8  ;;  %1015 = vmatpush3.msk.msra.mxu1 %vm205_vm1, %v175_v8 }
  0x1e   : > { %933 = vmatmul.mubr.msk.f32.gmra.mrb[6].mxu0 %vm183_vm2, %v179_v15  ;;  %964 = vmatmul.mubr.msk.f32.gmra.mrb[6].mxu1 %vm183_vm2, %v820_v16 }
  0x1f   : > { %935 = vmatprep.mubr.msk.f32.mxu0 %vm1083_vm0, %v1084_v6  ;;  %966 = vmatprep.mubr.msk.f32.mxu1 %vm1083_vm0, %v1084_v6 }
  0x22   : > { %936 = vmatmul.mubr.msk.f32.gmra.mrb[8].mxu0 %vm183_vm2, %v180_v17  ;;  %967 = vmatmul.mubr.msk.f32.gmra.mrb[8].mxu1 %vm183_vm2, %v821_v18 }
  0x23   : > { %938 = vmatprep.mubr.msk.f32.mxu0 %vm1083_vm0, %v1084_v6  ;;  %969 = vmatprep.mubr.msk.f32.mxu1 %vm1083_vm0, %v1084_v6 }
  0x26   : > { %939 = vmatmul.mubr.msk.f32.gmra.mrb[10].mxu0 %vm183_vm2, %v181_v19  ;;  %970 = vmatmul.mubr.msk.f32.gmra.mrb[10].mxu1 %vm183_vm2, %v822_v20 }
  0x27   : > { %941 = vmatprep.mubr.msk.f32.mxu0 %vm1083_vm0, %v1084_v6  ;;  %972 = vmatprep.mubr.msk.f32.mxu1 %vm1083_vm0, %v1084_v6 }
  0x2a   : > { %942 = vmatmul.mubr.msk.f32.gmra.mrb[12].mxu0 %vm183_vm2, %v182_v21  ;;  %973 = vmatmul.mubr.msk.f32.gmra.mrb[12].mxu1 %vm183_vm2, %v823_v22 }
  0x2b   : > { %985 = vmatprep.mubr.msk.f32.mxu0 %vm1083_vm0, %v1084_v6  ;;  %1016 = vmatprep.mubr.msk.f32.mxu1 %vm1083_vm0, %v1084_v6 }
  0x2e   : > { %986 = vmatmul.mubr.msk.f32.vlgmr.msra.gmra.mrb[14].mxu0 %vm183_vm2, %v832_v23  ;;  %1017 = vmatmul.mubr.msk.f32.vlgmr.msra.gmra.mrb[14].mxu1 %vm183_vm2, %v847_v24 }
  0x2f   : > { %988 = vmatprep.mubr.msk.f32.mxu0 %vm1083_vm0, %v1084_v6  ;;  %1019 = vmatprep.mubr.msk.f32.mxu1 %vm1083_vm0, %v1084_v6 }
  0x32   : > { %989 = vmatmul.mubr.msk.f32.gmra.mrb[16].mxu0 %vm183_vm2, %v833_v25  ;;  %1020 = vmatmul.mubr.msk.f32.gmra.mrb[16].mxu1 %vm183_vm2, %v848_v26 }
  0x33   : > { %991 = vmatprep.mubr.msk.f32.mxu0 %vm1083_vm0, %v1084_v6  ;;  %1022 = vmatprep.mubr.msk.f32.mxu1 %vm1083_vm0, %v1084_v6 }
  0x36   : > { %992 = vmatmul.mubr.msk.f32.gmra.mrb[18].mxu0 %vm183_vm2, %v834_v27  ;;  %1023 = vmatmul.mubr.msk.f32.gmra.mrb[18].mxu1 %vm183_vm2, %v849_v28 }
  0x37   : > { %994 = vmatprep.mubr.msk.f32.mxu0 %vm1083_vm0, %v1084_v6  ;;  %1025 = vmatprep.mubr.msk.f32.mxu1 %vm1083_vm0, %v1084_v6 }
  0x3a   : > { %995 = vmatmul.mubr.msk.f32.gmra.mrb[20].mxu0 %vm183_vm2, %v835_v29  ;;  %1026 = vmatmul.mubr.msk.f32.gmra.mrb[20].mxu1 %vm183_vm2, %v850_v30 }
  0x3b   : > { %997 = vmatprep.mubr.msk.f32.mxu0 %vm1083_vm0, %v1084_v6  ;;  %1028 = vmatprep.mubr.msk.f32.mxu1 %vm1083_vm0, %v1084_v6 }
  0x3e   : > { %998 = vmatmul.mubr.msk.f32.gmra.mrb[22].mxu0 %vm183_vm2, %v836_v31  ;;  %1029 = vmatmul.mubr.msk.f32.gmra.mrb[22].mxu1 %vm183_vm2, %v851_v32 }
  0x3f   : > { %1000 = vmatprep.mubr.msk.f32.mxu0 %vm1083_vm0, %v1084_v6  ;;  %1031 = vmatprep.mubr.msk.f32.mxu1 %vm1083_vm0, %v1084_v6 }
  0x42   : > { %1001 = vmatmul.mubr.msk.f32.gmra.mrb[24].mxu0 %vm183_vm2, %v837_v33  ;;  %1032 = vmatmul.mubr.msk.f32.gmra.mrb[24].mxu1 %vm183_vm2, %v852_v34 }
  0x43   : > { %1003 = vmatprep.mubr.msk.f32.mxu0 %vm1083_vm0, %v1084_v6  ;;  %1034 = vmatprep.mubr.msk.f32.mxu1 %vm1083_vm0, %v1084_v6 }
  0x46   : > { %1004 = vmatmul.mubr.msk.f32.gmra.mrb[26].mxu0 %vm183_vm2, %v838_v35  ;;  %1035 = vmatmul.mubr.msk.f32.gmra.mrb[26].mxu1 %vm183_vm2, %v853_v36 }
  0xe5   : > { %v275_v37 = vpop.f32.mrb[0].mxu0  ;;  %v404_v39 = vpop.f32.mrb[0].mxu1 }
  0xe6   : > { %v925_v38 = vpop.f32.mrb[1].mxu0  ;;  %v438_v40 = vmax.f32 %v275_v37, %v404_v39  ;;  %v956_v41 = vpop.f32.mrb[1].mxu1 }
  0xe9   : > { %v280_v42 = vpop.f32.mrb[2].mxu0  ;;  %v409_v44 = vpop.f32.mrb[2].mxu1 }
  0xea   : > { %v928_v43 = vpop.f32.mrb[3].mxu0  ;;  %v439_v45 = vmax.f32 %v280_v42, %v409_v44  ;;  %v959_v46 = vpop.f32.mrb[3].mxu1 }
  0xed   : > { %v285_v47 = vpop.f32.mrb[4].mxu0  ;;  %v414_v49 = vpop.f32.mrb[4].mxu1 }
  0xee   : > { %v931_v48 = vpop.f32.mrb[5].mxu0  ;;  %v440_v50 = vmax.f32 %v285_v47, %v414_v49  ;;  %v962_v51 = vpop.f32.mrb[5].mxu1 }
  0xf1   : > { %v290_v52 = vpop.f32.mrb[6].mxu0  ;;  %v419_v54 = vpop.f32.mrb[6].mxu1 }
  0xf2   : > { %v934_v53 = vpop.f32.mrb[7].mxu0  ;;  %v441_v55 = vmax.f32 %v290_v52, %v419_v54  ;;  %v965_v56 = vpop.f32.mrb[7].mxu1 }
  0xf5   : > { %v295_v57 = vpop.f32.mrb[8].mxu0  ;;  %v424_v59 = vpop.f32.mrb[8].mxu1 }
  0xf6   : > { %v937_v58 = vpop.f32.mrb[9].mxu0  ;;  %v442_v60 = vmax.f32 %v295_v57, %v424_v59  ;;  %v968_v61 = vpop.f32.mrb[9].mxu1 }
  0xf9   : > { %v300_v62 = vpop.f32.mrb[10].mxu0  ;;  %v429_v0 = vpop.f32.mrb[10].mxu1 }
  0xfa   : > { %v940_v63 = vpop.f32.mrb[11].mxu0  ;;  %v443_v1 = vmax.f32 %v300_v62, %v429_v0  ;;  %v971_v2 = vpop.f32.mrb[11].mxu1 }
  0xfd   : > { %v1256_v3 = vpop.f32.mrb[12].mxu0  ;;  %v434_v5 = vpop.f32.mrb[12].mxu1 }
  0xfe   : > { %v943_v4 = vpop.f32.mrb[13].mxu0  ;;  %v444_v6 = vmax.f32 %v1256_v3, %v434_v5  ;;  %v974_v7 = vpop.f32.mrb[13].mxu1 }
 0x101   : > { %v540_v8 = vpop.f32.mrb[14].mxu0  ;;  %v676_v11 = vpop.f32.mrb[14].mxu1 }
 0x102   : > { %v574_v9 = vmax.f32 %v438_v40, %v540_v8  ;;  %v987_v10 = vpop.f32.mrb[15].mxu0  ;;  %v1018_v13 = vpop.f32.mrb[15].mxu1 }
 0x104   : > { %v710_v14 = vmax.f32 %v574_v9, %v676_v11 }
 0x105   : > { %v545_v15 = vpop.f32.mrb[16].mxu0  ;;  %v681_v19 = vpop.f32.mrb[16].mxu1 }
 0x106   : > { %v724_v16 = vadd.f32 %v862_v12, %v710_v14  ;;  %v575_v17 = vmax.f32 %v439_v45, %v545_v15  ;;  %v990_v18 = vpop.f32.mrb[17].mxu0  ;;  %v1021_v20 = vpop.f32.mrb[17].mxu1 }
 0x108   : > { %v731_v21 = vmax.f32 %v724_v16, 0.0  ;;  %v711_v22 = vmax.f32 %v575_v17, %v681_v19 }
 0x109   : > { %v550_v23 = vpop.f32.mrb[18].mxu0  ;;  %v686_v27 = vpop.f32.mrb[18].mxu1 }
 0x10a   : > { %739 = vst.msk [vmem:[%s1266_s6] sm:$0xff] %vm738_vm3, %v731_v21  ;;  %v725_v24 = vadd.f32 %v862_v12, %v711_v22  ;;  %v576_v25 = vmax.f32 %v440_v50, %v550_v23  ;;  %v993_v26 = vpop.f32.mrb[19].mxu0  ;;  %v1024_v28 = vpop.f32.mrb[19].mxu1 }
 0x10c   : > { %v732_v29 = vmax.f32 %v725_v24, 0.0  ;;  %v712_v30 = vmax.f32 %v576_v25, %v686_v27 }
 0x10d   : > { %v555_v31 = vpop.f32.mrb[20].mxu0  ;;  %v691_v35 = vpop.f32.mrb[20].mxu1 }
 0x10e   : > { %740 = vst.msk [vmem:[%s1266_s6 + $0x8] sm:$0xff] %vm738_vm3, %v732_v29  ;;  %v726_v32 = vadd.f32 %v862_v12, %v712_v30  ;;  %v577_v33 = vmax.f32 %v441_v55, %v555_v31  ;;  %v996_v34 = vpop.f32.mrb[21].mxu0  ;;  %v1027_v36 = vpop.f32.mrb[21].mxu1 }
 0x110   : > { %v733_v37 = vmax.f32 %v726_v32, 0.0  ;;  %v713_v38 = vmax.f32 %v577_v33, %v691_v35 }
 0x111   : > { %v560_v39 = vpop.f32.mrb[22].mxu0  ;;  %v696_v43 = vpop.f32.mrb[22].mxu1 }
 0x112   : > { %741 = vst.msk [vmem:[%s1266_s6 + $0x10] sm:$0xff] %vm738_vm3, %v733_v37  ;;  %v727_v40 = vadd.f32 %v862_v12, %v713_v38  ;;  %v578_v41 = vmax.f32 %v442_v60, %v560_v39  ;;  %v999_v42 = vpop.f32.mrb[23].mxu0  ;;  %v1030_v44 = vpop.f32.mrb[23].mxu1 }
 0x114   : > { %v734_v45 = vmax.f32 %v727_v40, 0.0  ;;  %v714_v46 = vmax.f32 %v578_v41, %v696_v43 }
 0x115   : > { %v565_v47 = vpop.f32.mrb[24].mxu0  ;;  %v701_v51 = vpop.f32.mrb[24].mxu1 }
 0x116   : > { %742 = vst.msk [vmem:[%s1266_s6 + $0x18] sm:$0xff] %vm738_vm3, %v734_v45  ;;  %v728_v48 = vadd.f32 %v862_v12, %v714_v46  ;;  %v579_v49 = vmax.f32 %v443_v1, %v565_v47  ;;  %v1002_v50 = vpop.f32.mrb[25].mxu0  ;;  %v1033_v52 = vpop.f32.mrb[25].mxu1 }
 0x118   : > { %v735_v53 = vmax.f32 %v728_v48, 0.0  ;;  %v715_v54 = vmax.f32 %v579_v49, %v701_v51 }
 0x119   : > { %v570_v55 = vpop.f32.mrb[26].mxu0  ;;  %v706_v59 = vpop.f32.mrb[26].mxu1 }
 0x11a   : > { %743 = vst.msk [vmem:[%s1266_s6 + $0x20] sm:$0xff] %vm738_vm3, %v735_v53  ;;  %v729_v56 = vadd.f32 %v862_v12, %v715_v54  ;;  %v580_v57 = vmax.f32 %v444_v6, %v570_v55  ;;  %v1005_v58 = vpop.f32.mrb[27].mxu0  ;;  %v1036_v60 = vpop.f32.mrb[27].mxu1 }
 0x11c   : > { %v736_v61 = vmax.f32 %v729_v56, 0.0  ;;  %v716_v62 = vmax.f32 %v580_v57, %v706_v59 }
 0x11e   : > { %744 = vst.msk [vmem:[%s1266_s6 + $0x28] sm:$0xff] %vm738_vm3, %v736_v61  ;;  %v730_v63 = vadd.f32 %v862_v12, %v716_v62 }
 0x120   : > { %v737_v0 = vmax.f32 %v730_v63, 0.0 }
 0x122   : > { %746 = vst.msk [vmem:[%s1266_s6 + $0x30] sm:$0x1] %vm745_vm4, %v737_v0 }
 0x123 PF: > { %s13_s12 = sadd.s32 1, %s1080_s12  }
 0x124   : > { %p10_p4 = scmp.ge.s32.totalorder %s13_s12, 4  }
 0x126   :  { %12 = sbr.rel (!%p10_p4) target bundleno = 1 (0x1), region = 65 }

// kernel: _lambda_.4
= control target key start
LH: loop header
LB: loop body
LE: loop exit
PB: predicated region body
PF: predicated region fallthrough
CT: control target
= control target key end

     0   :  { %s2317_s24 = smov 0   ;;  %s3083_s0 = inlined_call_operand.vmem [shape: f32[2,4,4,288], index: 0, kind: input, shape index: {}]   ;;  %s3084_s1 = inlined_call_operand.vmem [shape: f32[288,128], index: 1, kind: input, shape index: {}]   ;;  %s3085_s2 = inlined_call_operand.vmem [shape: f32[1,128], index: 2, kind: input, shape index: {}]   ;;  %s3086_s3 = inlined_call_operand.vmem [shape: f32[4,128,256], index: 3, kind: input, shape index: {}]   ;;  %s3087_s4 = inlined_call_operand.vmem [shape: f32[1,256], index: 4, kind: input, shape index: {}]   ;;  %s3088_s5 = inlined_call_operand.vmem [shape: f32[256,6], index: 5, kind: input, shape index: {}]   ;;  %s3089_s6 = inlined_call_operand.vmem [shape: f32[1,6], index: 6, kind: input, shape index: {}]   ;;  %s3090_s7 = inlined_call_operand.vmem [shape: f32[2,1,6], index: 7, kind: output, shape index: {}]  }
   0x1 LB: > { %s1582_s25 = sadd.s32 4294967295, %s2271_s24   ;;  %p1586_p0 = scmp.ge.s32.totalorder %s2271_s24, 1  ;;  %s2271_s24 = sphi %s2317_s24, %s17_s24  }
   0x2   : > { %p237_p1 = scmp.lt.s32.totalorder %s2271_s24, 3 }
   0x4   : > { %p238_p2 = pnand %p1586_p0, %p237_p1 }
   0x5   : > { %v291_v0 = vld [vmem:[%s3084_s1 + $0x80] sm:$0xff] (!%p238_p2)  ;;  %v292_v1 = vld [vmem:[%s3084_s1 + $0x88] sm:$0xff] (!%p238_p2)  ;;  %v2273_v3 = vmov (!%p238_p2), 0.0|0.0   ;;  %vm2274_vm0 = vmmov (!%p238_p2), 0   ;;  %v2275_v8 = vmov (!%p238_p2), 0.0   ;;  %p267_p3 = scmp.lt.s32.totalorder (!%p238_p2), %s1582_s25, 1 }
   0x6   : > { %241 = sbr.rel (%p238_p2) target bundleno = 804 (0x324), region = 48  ;;  %v307_v2 = vld [vmem:[%s3084_s1 + $0x100] sm:$0xff] (!%p238_p2)  ;;  %1968 = vmatprep.subr.bf16.mxu1 (!%p238_p2), %v2273_v3  ;;  %v2335_v4 = vpack.c.bf16 (!%p238_p2), %v292_v1, %v291_v0  ;;  %v308_v5 = vld [vmem:[%s3084_s1 + $0x108] sm:$0xff] (!%p238_p2)  ;;  %1900 = vmatprep.mubr.msk.f32.mxu1 (!%p238_p2), %vm2274_vm0, %v2275_v8  ;;  %v293_v11 = vld [vmem:[%s3084_s1 + $0x90] sm:$0xff] (!%p238_p2)  ;;  %vm317_vm1 = vcmask (!%p238_p2), 261120   ;;  %vm1533_vm2 = vcmask (!%p238_p2), 40960  }
   0x7   : > { %v275_v6 = vld [vmem:[%s3084_s1] sm:$0xff] (!%p238_p2)  ;;  %v276_v7 = vld [vmem:[%s3084_s1 + $0x8] sm:$0xff] (!%p238_p2)  ;;  %v2348_v9 = vpack.c.bf16 (!%p238_p2), %v308_v5, %v307_v2  ;;  %v294_v12 = vld [vmem:[%s3084_s1 + $0x98] sm:$0xff] (!%p238_p2) }
   0x8   : > { %v2350_v10 = vpack.c.bf16 (!%p238_p2), %v276_v7, %v275_v6  ;;  %v309_v13 = vld [vmem:[%s3084_s1 + $0x110] sm:$0xff] (!%p238_p2)  ;;  %1937 = vmatprep.subr.bf16.mxu0 (!%p238_p2), %v2335_v4  ;;  %v2362_v14 = vpack.c.bf16 (!%p238_p2), %v294_v12, %v293_v11  ;;  %v310_v15 = vld [vmem:[%s3084_s1 + $0x118] sm:$0xff] (!%p238_p2)  ;;  %v295_v20 = vld [vmem:[%s3084_s1 + $0xa0] sm:$0xff] (!%p238_p2) }
   0x9   : > { %v277_v16 = vld [vmem:[%s3084_s1 + $0x10] sm:$0xff] (!%p238_p2)  ;;  %v278_v17 = vld [vmem:[%s3084_s1 + $0x18] sm:$0xff] (!%p238_p2)  ;;  %1970 = vmatpush3.bf16.msra.mxu1 (!%p238_p2), %v2348_v9  ;;  %v2377_v18 = vpack.c.bf16 (!%p238_p2), %v310_v15, %v309_v13  ;;  %v296_v21 = vld [vmem:[%s3084_s1 + $0xa8] sm:$0xff] (!%p238_p2) }
   0xa   : > { %1939 = vmatpush3.bf16.msra.mxu0 (!%p238_p2), %v2350_v10  ;;  %v2379_v19 = vpack.c.bf16 (!%p238_p2), %v278_v17, %v277_v16  ;;  %1971 = vmatprep.subr.bf16.mxu1 (!%p238_p2), %v2273_v3  ;;  %v2390_v22 = vpack.c.bf16 (!%p238_p2), %v296_v21, %v295_v20  ;;  %v279_v23 = vld [vmem:[%s3084_s1 + $0x20] sm:$0xff] (!%p238_p2)  ;;  %v280_v24 = vld [vmem:[%s3084_s1 + $0x28] sm:$0xff] (!%p238_p2)  ;;  %v297_v25 = vld [vmem:[%s3084_s1 + $0xb0] sm:$0xff] (!%p238_p2) }
   0xb   : > { %1941 = vmatprep.subr.bf16.mxu0 (!%p238_p2), %v2362_v14  ;;  %v298_v26 = vld [vmem:[%s3084_s1 + $0xb8] sm:$0xff] (!%p238_p2)  ;;  %v2412_v28 = vpack.c.bf16 (!%p238_p2), %v280_v24, %v279_v23  ;;  %v281_v30 = vld [vmem:[%s3084_s1 + $0x30] sm:$0xff] (!%p238_p2)  ;;  %v299_v32 = vld [vmem:[%s3084_s1 + $0xc0] sm:$0xff] (!%p238_p2) }
   0xc   : > { %v2416_v29 = vpack.c.bf16 (!%p238_p2), %v298_v26, %v297_v25  ;;  %v282_v31 = vld [vmem:[%s3084_s1 + $0x38] sm:$0xff] (!%p238_p2)  ;;  %v300_v33 = vld [vmem:[%s3084_s1 + $0xc8] sm:$0xff] (!%p238_p2)  ;;  %v283_v38 = vld [vmem:[%s3084_s1 + $0x40] sm:$0xff] (!%p238_p2) }
   0xd   : > { %s3092_s25 = smov (!%p267_p3, %s1582_s25), 1  ;;  %1973 = vmatpush3.bf16.msra.mxu1 %v2377_v18  ;;  %v2433_v34 = vpack.c.bf16 %v282_v31, %v281_v30  ;;  %v2439_v37 = vpack.c.bf16 %v300_v33, %v299_v32  ;;  %v284_v39 = vld [vmem:[%s3084_s1 + $0x48] sm:$0xff]  ;;  %v301_v42 = vld [vmem:[%s3084_s1 + $0xd0] sm:$0xff]  ;;  %v302_v43 = vld [vmem:[%s3084_s1 + $0xd8] sm:$0xff] }
   0xe   : > { %s2248_s10 = smul.u32 48, %s3092_s25  ;;  %1943 = vmatpush3.bf16.msra.mxu0 %v2379_v19  ;;  %1975 = vmatprep.subr.bf16.mxu1 %v2335_v4  ;;  %v2455_v44 = vpack.c.bf16 %v284_v39, %v283_v38  ;;  %v2459_v45 = vpack.c.bf16 %v302_v43, %v301_v42  ;;  %v285_v46 = vld [vmem:[%s3084_s1 + $0x50] sm:$0xff]  ;;  %v286_v47 = vld [vmem:[%s3084_s1 + $0x58] sm:$0xff]  ;;  %v303_v48 = vld [vmem:[%s3084_s1 + $0xe0] sm:$0xff]  ;;  %s274_s9 = scalar_lea.vmem %s3090_s7, %s3092_s25 }
   0xf   : > { %1945 = vmatprep.subr.bf16.mxu0 %v2390_v22  ;;  %v304_v49 = vld [vmem:[%s3084_s1 + $0xe8] sm:$0xff]  ;;  %v2475_v50 = vpack.c.bf16 %v286_v47, %v285_v46  ;;  %v287_v52 = vld [vmem:[%s3084_s1 + $0x60] sm:$0xff]  ;;  %v305_v54 = vld [vmem:[%s3084_s1 + $0xf0] sm:$0xff] }
  0x10   : > { %s2407_s21 = scalar_lea.vmem %s3083_s0, %s2248_s10  ;;  %v2479_v51 = vpack.c.bf16 %v304_v49, %v303_v48  ;;  %v288_v53 = vld [vmem:[%s3084_s1 + $0x68] sm:$0xff]  ;;  %v306_v55 = vld [vmem:[%s3084_s1 + $0xf8] sm:$0xff]  ;;  %v289_v58 = vld [vmem:[%s3084_s1 + $0x70] sm:$0xff] }
  0x11   : > { %v312_v27 = vld [vmem:[%s2407_s21 + $0x8] sm:$0xf]  ;;  %v311_v35 = vld [vmem:[%s2407_s21] sm:$0xff]  ;;  %v1589_v36 = vld [vmem:[%s2407_s21 + $0xc] sm:$0xff]  ;;  %v2495_v56 = vpack.c.bf16 %v288_v53, %v287_v52  ;;  %v2499_v57 = vpack.c.bf16 %v306_v55, %v305_v54 }
  0x12   : > { %1901 = vmatmul.mubr.msk.f32.vlgmr.msra.gmra.mrb[0].mxu1 %vm317_vm1, %v312_v27  ;;  %1947 = vmatpush3.bf16.msra.mxu0 %v2412_v28  ;;  %v315_v40 = vcombine.high %v311_v35, %v311_v35  ;;  %v465_v41 = vcombine.high %v1589_v36, %v1589_v36  ;;  %v290_v59 = vld [vmem:[%s3084_s1 + $0x78] sm:$0xff]  ;;  %v1590_v63 = vld [vmem:[%s2407_s21 + $0x14] sm:$0xf]  ;;  %v1595_v0 = vld [vmem:[%s2407_s21 + $0x24] sm:$0xff] }
  0x13   : > { %1977 = vmatpush3.bf16.msra.mxu1 %v2350_v10  ;;  %1949 = vmatprep.subr.bf16.mxu0 %v2416_v29  ;;  %v2509_v60 = vpack.c.bf16 %v290_v59, %v289_v58  ;;  %v1592_v61 = vld [vmem:[%s2407_s21 + $0x18] sm:$0xff]  ;;  %v1593_v1 = vld [vmem:[%s2407_s21 + $0x20] sm:$0xf]  ;;  %v765_v2 = vcombine.high %v1595_v0, %v1595_v0  ;;  %v921_v5 = vld [vmem:[%s3086_s3 + $0x8] sm:$0xff] }
  0x14   : > { %1979 = vmatprep.subr.bf16.mxu1 %v2362_v14  ;;  %384 = vmatprep.mubr.f32.mxu0 %v315_v40  ;;  %v615_v62 = vcombine.high %v1592_v61, %v1592_v61  ;;  %v923_v6 = vld [vmem:[%s3086_s3 + $0x18] sm:$0xff]  ;;  %v920_v7 = vld [vmem:[%s3086_s3] sm:$0xff]  ;;  %v1601_v15 = vld [vmem:[%s3086_s3 + $0x110] sm:$0xff] }
  0x15   : > { %533 = vmatprep.mubr.f32.mxu1 %v465_v41  ;;  %v1602_v11 = vld [vmem:[%s3086_s3 + $0x118] sm:$0xff]  ;;  %v925_v16 = vld [vmem:[%s3086_s3 + $0x28] sm:$0xff]  ;;  %v926_v20 = vld [vmem:[%s3086_s3 + $0x30] sm:$0xff] }
  0x16   : > { %1951 = vmatpush3.bf16.msra.mxu0 %v2433_v34  ;;  %v1604_v23 = vld [vmem:[%s3086_s3 + $0x128] sm:$0xff]  ;;  %v1606_v24 = vld [vmem:[%s3086_s3 + $0x138] sm:$0xff]  ;;  %v1603_v25 = vld [vmem:[%s3086_s3 + $0x120] sm:$0xff] }
  0x17   : > { %1981 = vmatpush3.bf16.msra.mxu1 %v2379_v19  ;;  %1953 = vmatprep.subr.bf16.mxu0 %v2439_v37  ;;  %v2124_v26 = vpack.c.bf16 %v1606_v24, %v1604_v23  ;;  %v1605_v27 = vld [vmem:[%s3086_s3 + $0x130] sm:$0xff]  ;;  %v928_v32 = vld [vmem:[%s3086_s3 + $0x40] sm:$0xff]  ;;  %v933_v40 = vld [vmem:[%s3086_s3 + $0x68] sm:$0xff] }
  0x18   : > { %1983 = vmatprep.subr.bf16.mxu1 %v2390_v22  ;;  %v2126_v30 = vpack.c.bf16 %v1605_v27, %v1603_v25  ;;  %v930_v33 = vld [vmem:[%s3086_s3 + $0x50] sm:$0xff]  ;;  %v935_v41 = vld [vmem:[%s3086_s3 + $0x78] sm:$0xff]  ;;  %v932_v42 = vld [vmem:[%s3086_s3 + $0x60] sm:$0xff] }
  0x19   : > { %v2098_v38 = vpack.c.bf16 %v930_v33, %v928_v32  ;;  %v1612_v46 = vld [vmem:[%s3086_s3 + $0x168] sm:$0xff]  ;;  %v1614_v47 = vld [vmem:[%s3086_s3 + $0x178] sm:$0xff]  ;;  %v1611_v49 = vld [vmem:[%s3086_s3 + $0x160] sm:$0xff] }
  0x1a   : > { %1955 = vmatpush3.bf16.msra.mxu0 %v2455_v44  ;;  %v2132_v48 = vpack.c.bf16 %v1614_v47, %v1612_v46  ;;  %v937_v53 = vld [vmem:[%s3086_s3 + $0x88] sm:$0xff]  ;;  %v939_v54 = vld [vmem:[%s3086_s3 + $0x98] sm:$0xff]  ;;  %v1623_v23 = vld [vmem:[%s3086_s3 + $0x1c0] sm:$0xff] }
  0x1b   : > { %1985 = vmatpush3.bf16.msra.mxu1 %v2412_v28  ;;  %1957 = vmatprep.subr.bf16.mxu0 %v2459_v45  ;;  %v2104_v55 = vpack.c.bf16 %v939_v54, %v937_v53  ;;  %v1616_v59 = vld [vmem:[%s3086_s3 + $0x188] sm:$0xff]  ;;  %v1625_v24 = vld [vmem:[%s3086_s3 + $0x1d0] sm:$0xff]  ;;  %v951_v27 = vld [vmem:[%s3086_s3 + $0xf8] sm:$0xff] }
  0x1c   : > { %1987 = vmatprep.subr.bf16.mxu1 %v2416_v29  ;;  %v2146_v25 = vpack.c.bf16 %v1625_v24, %v1623_v23  ;;  %v1628_v32 = vld [vmem:[%s3086_s3 + $0x1e8] sm:$0xff]  ;;  %v1630_v33 = vld [vmem:[%s3086_s3 + $0x1f8] sm:$0xff] }
  0x1d   : > { %v1640_v24 = vld [vmem:[%s3086_s3 + $0x248] sm:$0xff] }
  0x1e   : > { %1959 = vmatpush3.bf16.msra.mxu0 %v2475_v50 }
  0x1f   : > { %1989 = vmatpush3.bf16.msra.mxu1 %v2433_v34  ;;  %1961 = vmatprep.subr.bf16.mxu0 %v2479_v51 }
  0x20   : > { %1991 = vmatprep.subr.bf16.mxu1 %v2439_v37 }
  0x22   : > { %1963 = vmatpush3.bf16.msra.mxu0 %v2495_v56 }
  0x23   : > { %1993 = vmatpush3.bf16.msra.mxu1 %v2455_v44  ;;  %1965 = vmatprep.subr.bf16.mxu0 %v2499_v57 }
  0x24   : > { %1995 = vmatprep.subr.bf16.mxu1 %v2459_v45 }
  0x26   : > { %1967 = vmatpush3.bf16.msra.mxu0 %v2509_v60 }
  0x27   : > { %1997 = vmatpush3.bf16.msra.mxu1 %v2475_v50  ;;  %2013 = vmatprep.subr.bf16.mxu0 %v2335_v4 }
  0x28   : > { %1999 = vmatprep.subr.bf16.mxu1 %v2479_v51 }
  0x29   : > { %385 = vmatmul.mubr.f32.vlgmr.msra.gmra.mrb[0].mxu0 %v311_v35  ;;  %v1610_v35 = vld [vmem:[%s3086_s3 + $0x158] sm:$0xff] }
  0x2a   : > { %2015 = vmatpush3.bf16.msra.mxu0 %v2350_v10  ;;  %683 = vmatprep.mubr.f32.mxu0 %v615_v62  ;;  %v1615_v62 = vld [vmem:[%s3086_s3 + $0x180] sm:$0xff] }
  0x2b   : > { %2001 = vmatpush3.bf16.msra.mxu1 %v2495_v56  ;;  %2017 = vmatprep.subr.bf16.mxu0 %v2362_v14 }
  0x2c   : > { %2003 = vmatprep.subr.bf16.mxu1 %v2499_v57 }
  0x2e   : > { %2019 = vmatpush3.bf16.msra.mxu0 %v2379_v19 }
  0x2f   : > { %2005 = vmatpush3.bf16.msra.mxu1 %v2509_v60  ;;  %2021 = vmatprep.subr.bf16.mxu0 %v2390_v22 }
  0x30   : > { %2006 = vmatprep.subr.bf16.mxu1 %v2273_v3 }
  0x32   : > { %534 = vmatmul.mubr.f32.vlgmr.msra.gmra.mrb[2].mxu1 %v1589_v36  ;;  %2023 = vmatpush3.bf16.msra.mxu0 %v2412_v28  ;;  %v1607_v36 = vld [vmem:[%s3086_s3 + $0x140] sm:$0xff] }
  0x33   : > { %2008 = vmatpush3.bf16.msra.mxu1 %v2348_v9  ;;  %2025 = vmatprep.subr.bf16.mxu0 %v2416_v29 }
  0x34   : > { %2009 = vmatprep.subr.bf16.mxu1 %v2273_v3  ;;  %1911 = vmatprep.mubr.msk.f32.mxu1 %vm2274_vm0, %v2275_v8 }
  0x36   : > { %2027 = vmatpush3.bf16.msra.mxu0 %v2433_v34 }
  0x37   : > { %2011 = vmatpush3.bf16.msra.mxu1 %v2377_v18  ;;  %2029 = vmatprep.subr.bf16.mxu0 %v2439_v37 }
  0x38   : > { %2044 = vmatprep.subr.bf16.mxu1 %v2273_v3 }
  0x3a   : > { %1912 = vmatmul.mubr.msk.f32.vlgmr.msra.gmra.mrb[4].mxu1 %vm317_vm1, %v1590_v63  ;;  %2031 = vmatpush3.bf16.msra.mxu0 %v2455_v44  ;;  %v1617_v63 = vld [vmem:[%s3086_s3 + $0x190] sm:$0xff] }
  0x3b   : > { %2046 = vmatpush3.bf16.msra.mxu1 %v2348_v9  ;;  %2033 = vmatprep.subr.bf16.mxu0 %v2459_v45 }
  0x3c   : > { %2047 = vmatprep.subr.bf16.mxu1 %v2273_v3  ;;  %1922 = vmatprep.mubr.msk.f32.mxu1 %vm2274_vm0, %v2275_v8 }
  0x3e   : > { %2035 = vmatpush3.bf16.msra.mxu0 %v2475_v50 }
  0x3f   : > { %2049 = vmatpush3.bf16.msra.mxu1 %v2377_v18  ;;  %2037 = vmatprep.subr.bf16.mxu0 %v2479_v51 }
  0x40   : > { %2051 = vmatprep.subr.bf16.mxu1 %v2335_v4  ;;  %v1596_v4 = vld [vmem:[%s2407_s21 + $0x2c] sm:$0xf] }
  0x42   : > { %1923 = vmatmul.mubr.msk.f32.vlgmr.msra.gmra.mrb[6].mxu1 %vm317_vm1, %v1593_v1  ;;  %2039 = vmatpush3.bf16.msra.mxu0 %v2495_v56  ;;  %v941_v1 = vld [vmem:[%s3086_s3 + $0xa8] sm:$0xff] }
  0x43   : > { %2053 = vmatpush3.bf16.msra.mxu1 %v2350_v10  ;;  %2041 = vmatprep.subr.bf16.mxu0 %v2499_v57  ;;  %v1600_v10 = vld [vmem:[%s3086_s3 + $0x108] sm:$0xff] }
  0x44   : > { %2055 = vmatprep.subr.bf16.mxu1 %v2362_v14  ;;  %833 = vmatprep.mubr.f32.mxu1 %v765_v2  ;;  %v2120_v13 = vpack.c.bf16 %v1602_v11, %v1600_v10  ;;  %v1599_v14 = vld [vmem:[%s3086_s3 + $0x100] sm:$0xff]  ;;  %v943_v2 = vld [vmem:[%s3086_s3 + $0xb8] sm:$0xff]  ;;  %v1621_v11 = vld [vmem:[%s3086_s3 + $0x1b0] sm:$0xff] }
  0x45   : > { %v2122_v17 = vpack.c.bf16 %v1601_v15, %v1599_v14  ;;  %v1619_v10 = vld [vmem:[%s3086_s3 + $0x1a0] sm:$0xff]  ;;  %v945_v14 = vld [vmem:[%s3086_s3 + $0xc8] sm:$0xff]  ;;  %v947_v15 = vld [vmem:[%s3086_s3 + $0xd8] sm:$0xff] }
  0x46   : > { %2043 = vmatpush3.bf16.msra.mxu0 %v2509_v60 }
  0x47   : > { %2057 = vmatpush3.bf16.msra.mxu1 %v2379_v19  ;;  %v924_v19 = vld [vmem:[%s3086_s3 + $0x20] sm:$0xff] }
  0x48   : > { %2059 = vmatprep.subr.bf16.mxu1 %v2390_v22  ;;  %v2094_v22 = vpack.c.bf16 %v926_v20, %v924_v19  ;;  %v1624_v20 = vld [vmem:[%s3086_s3 + $0x1c8] sm:$0xff] }
  0x49   : > { %684 = vmatmul.mubr.f32.vlgmr.msra.gmra.mrb[2].mxu0 %v1592_v61 }
  0x4a   : > { %1016 = vmatprep.mubr.f32.mxu0 %v2275_v8 }
  0x4b   : > { %2061 = vmatpush3.bf16.msra.mxu1 %v2412_v28  ;;  %v929_v28 = vld [vmem:[%s3086_s3 + $0x48] sm:$0xff] }
  0x4c   : > { %2063 = vmatprep.subr.bf16.mxu1 %v2416_v29  ;;  %v931_v29 = vld [vmem:[%s3086_s3 + $0x58] sm:$0xff] }
  0x4d   : > { %v2096_v31 = vpack.c.bf16 %v931_v29, %v929_v28  ;;  %v948_v29 = vld [vmem:[%s3086_s3 + $0xe0] sm:$0xff] }
  0x4f   : > { %2065 = vmatpush3.bf16.msra.mxu1 %v2433_v34  ;;  %v1608_v34 = vld [vmem:[%s3086_s3 + $0x148] sm:$0xff] }
  0x50   : > { %2067 = vmatprep.subr.bf16.mxu1 %v2439_v37  ;;  %v1609_v37 = vld [vmem:[%s3086_s3 + $0x150] sm:$0xff]  ;;  %v2128_v39 = vpack.c.bf16 %v1610_v35, %v1608_v34  ;;  %v2148_v34 = vpack.c.bf16 %v1630_v33, %v1628_v32  ;;  %v1627_v35 = vld [vmem:[%s3086_s3 + $0x1e0] sm:$0xff]  ;;  %v1674_v32 = vld [vmem:[%s3086_s3 + $0x358] sm:$0xff] }
  0x51   : > { %v2130_v43 = vpack.c.bf16 %v1609_v37, %v1607_v36  ;;  %v1629_v36 = vld [vmem:[%s3086_s3 + $0x1f0] sm:$0xff] }
  0x52   : > { %v2150_v37 = vpack.c.bf16 %v1629_v36, %v1627_v35  ;;  %v1641_v35 = vld [vmem:[%s3086_s3 + $0x250] sm:$0xff] }
  0x53   : > { %2069 = vmatpush3.bf16.msra.mxu1 %v2455_v44  ;;  %v2100_v44 = vpack.c.bf16 %v935_v41, %v933_v40  ;;  %v1664_v41 = vld [vmem:[%s3086_s3 + $0x308] sm:$0xff] }
  0x54   : > { %2071 = vmatprep.subr.bf16.mxu1 %v2459_v45  ;;  %v934_v45 = vld [vmem:[%s3086_s3 + $0x70] sm:$0xff] }
  0x57   : > { %2073 = vmatpush3.bf16.msra.mxu1 %v2475_v50  ;;  %v1613_v50 = vld [vmem:[%s3086_s3 + $0x170] sm:$0xff] }
  0x58   : > { %2075 = vmatprep.subr.bf16.mxu1 %v2479_v51  ;;  %v2102_v51 = vpack.c.bf16 %v934_v45, %v932_v42  ;;  %v2134_v52 = vpack.c.bf16 %v1613_v50, %v1611_v49  ;;  %v1666_v42 = vld [vmem:[%s3086_s3 + $0x318] sm:$0xff] }
  0x5b   : > { %2077 = vmatpush3.bf16.msra.mxu1 %v2495_v56  ;;  %v936_v56 = vld [vmem:[%s3086_s3 + $0x80] sm:$0xff] }
  0x5c   : > { %2079 = vmatprep.subr.bf16.mxu1 %v2499_v57  ;;  %v938_v57 = vld [vmem:[%s3086_s3 + $0x90] sm:$0xff] }
  0x5d   : > { %v2106_v58 = vpack.c.bf16 %v938_v57, %v936_v56 }
  0x5f   : > { %2081 = vmatpush3.bf16.msra.mxu1 %v2509_v60  ;;  %v1618_v60 = vld [vmem:[%s3086_s3 + $0x198] sm:$0xff] }
  0x60   : > { %2082 = vmatprep.subr.bf16.mxu1 %v2273_v3  ;;  %v2136_v61 = vpack.c.bf16 %v1618_v60, %v1616_v59 }
  0x62   : > { %834 = vmatmul.mubr.f32.vlgmr.msra.gmra.mrb[8].mxu1 %v1595_v0  ;;  %v2138_v0 = vpack.c.bf16 %v1617_v63, %v1615_v62 }
  0x63   : > { %2084 = vmatpush3.bf16.msra.mxu1 %v2348_v9  ;;  %1933 = vmatprep.mubr.msk.f32.mxu1 %vm2274_vm0, %v2275_v8  ;;  %v922_v9 = vld [vmem:[%s3086_s3 + $0x10] sm:$0xff] }
  0x64   : > { %2085 = vmatprep.subr.bf16.mxu1 %v2273_v3  ;;  %v2088_v3 = vpack.c.bf16 %v923_v6, %v921_v5  ;;  %v2090_v12 = vpack.c.bf16 %v922_v9, %v920_v7  ;;  %v940_v5 = vld [vmem:[%s3086_s3 + $0xa0] sm:$0xff]  ;;  %v942_v6 = vld [vmem:[%s3086_s3 + $0xb0] sm:$0xff]  ;;  %v1620_v7 = vld [vmem:[%s3086_s3 + $0x1a8] sm:$0xff] }
  0x65   : > { %v1622_v9 = vld [vmem:[%s3086_s3 + $0x1b8] sm:$0xff] }
  0x66   : > { %2089 = vmatprep.subr.bf16.mxu0 %v2088_v3  ;;  %v2110_v3 = vpack.c.bf16 %v942_v6, %v940_v5 }
  0x67   : > { %2087 = vmatpush3.bf16.msra.mxu1 %v2377_v18  ;;  %v927_v18 = vld [vmem:[%s3086_s3 + $0x38] sm:$0xff]  ;;  %2091 = vmatpush1.bf16.msra.mxu0 %v2090_v12  ;;  %v2140_v12 = vpack.c.bf16 %v1622_v9, %v1620_v7  ;;  %v1598_v7 = vld [vmem:[%s3085_s2] ss:$0 sm:$0xff] }
  0x68   : > { %2121 = vmatprep.subr.bf16.mxu1 %v2120_v13  ;;  %v2092_v21 = vpack.c.bf16 %v927_v18, %v925_v16  ;;  %v2142_v13 = vpack.c.bf16 %v1621_v11, %v1619_v10  ;;  %v2112_v16 = vpack.c.bf16 %v947_v15, %v945_v14  ;;  %v946_v18 = vld [vmem:[%s3086_s3 + $0xd0] sm:$0xff]  ;;  %v1631_v9 = vld [vmem:[%s3086_s3 + $0x200] sm:$0xff]  ;;  %v1636_v11 = vld [vmem:[%s3086_s3 + $0x228] sm:$0xff] }
  0x69   : > { %v1633_v10 = vld [vmem:[%s3086_s3 + $0x210] sm:$0xff]  ;;  %v1663_v14 = vld [vmem:[%s3086_s3 + $0x300] sm:$0xff] }
  0x6a   : > { %1934 = vmatmul.mubr.msk.f32.vlgmr.msra.gmra.mrb[10].mxu1 %vm317_vm1, %v1596_v4  ;;  %2093 = vmatprep.subr.bf16.mxu0 %v2092_v21  ;;  %v2108_v4 = vpack.c.bf16 %v943_v2, %v941_v1  ;;  %v1626_v21 = vld [vmem:[%s3086_s3 + $0x1d8] sm:$0xff]  ;;  %v1665_v15 = vld [vmem:[%s3086_s3 + $0x310] sm:$0xff] }
  0x6b   : > { %1142 = vmatprep.mubr.f32.mxu1 %v2275_v8  ;;  %2123 = vmatpush1.bf16.msra.mxu1 %v2122_v17  ;;  %v944_v17 = vld [vmem:[%s3086_s3 + $0xc0] sm:$0xff]  ;;  %v2186_v23 = vpack.c.bf16 %v1665_v15, %v1663_v14  ;;  %v1688_v15 = vld [vmem:[%s3086_s3 + $0x3c8] sm:$0xff] }
  0x6c   : > { %2125 = vmatprep.subr.bf16.mxu1 %v2124_v26  ;;  %2095 = vmatpush1.bf16.msra.mxu0 %v2094_v22  ;;  %v2114_v19 = vpack.c.bf16 %v946_v18, %v944_v17  ;;  %v2144_v22 = vpack.c.bf16 %v1626_v21, %v1624_v20  ;;  %v949_v26 = vld [vmem:[%s3086_s3 + $0xe8] sm:$0xff]  ;;  %v1670_v18 = vld [vmem:[%s3086_s3 + $0x338] sm:$0xff]  ;;  %v1635_v21 = vld [vmem:[%s3086_s3 + $0x220] sm:$0xff] }
  0x6d   : > { %2097 = vmatprep.subr.bf16.mxu0 %v2096_v31  ;;  %v2116_v28 = vpack.c.bf16 %v951_v27, %v949_v26  ;;  %v1668_v17 = vld [vmem:[%s3086_s3 + $0x328] sm:$0xff] }
  0x6e   : > { %v2188_v27 = vpack.c.bf16 %v1670_v18, %v1668_v17  ;;  %v1655_v18 = vld [vmem:[%s3086_s3 + $0x2c0] sm:$0xff] }
  0x6f   : > { %2127 = vmatpush1.bf16.msra.mxu1 %v2126_v30  ;;  %v950_v30 = vld [vmem:[%s3086_s3 + $0xf0] sm:$0xff] }
  0x70   : > { %2129 = vmatprep.subr.bf16.mxu1 %v2128_v39  ;;  %2099 = vmatpush1.bf16.msra.mxu0 %v2098_v38  ;;  %v2118_v31 = vpack.c.bf16 %v950_v30, %v948_v29  ;;  %v1632_v38 = vld [vmem:[%s3086_s3 + $0x208] sm:$0xff]  ;;  %v1634_v39 = vld [vmem:[%s3086_s3 + $0x218] sm:$0xff]  ;;  %v1669_v29 = vld [vmem:[%s3086_s3 + $0x330] sm:$0xff] }
  0x71   : > { %2101 = vmatprep.subr.bf16.mxu0 %v2100_v44  ;;  %v2152_v40 = vpack.c.bf16 %v1634_v39, %v1632_v38  ;;  %v1646_v38 = vld [vmem:[%s3086_s3 + $0x278] sm:$0xff] }
  0x73   : > { %2131 = vmatpush1.bf16.msra.mxu1 %v2130_v43  ;;  %v2184_v43 = vpack.c.bf16 %v1666_v42, %v1664_v41  ;;  %v1673_v41 = vld [vmem:[%s3086_s3 + $0x350] sm:$0xff] }
  0x74   : > { %2133 = vmatprep.subr.bf16.mxu1 %v2132_v48  ;;  %2103 = vmatpush1.bf16.msra.mxu0 %v2102_v51 }
  0x75   : > { %2105 = vmatprep.subr.bf16.mxu0 %v2104_v55 }
  0x77   : > { %2135 = vmatpush1.bf16.msra.mxu1 %v2134_v52 }
  0x78   : > { %2107 = vmatpush1.bf16.msra.mxu0 %v2106_v58  ;;  %2137 = vmatprep.subr.bf16.mxu1 %v2136_v61 }
  0x79   : > { %2109 = vmatprep.subr.bf16.mxu0 %v2108_v4 }
  0x7b   : > { %2139 = vmatpush1.bf16.msra.mxu1 %v2138_v0 }
  0x7c   : > { %2111 = vmatpush1.bf16.msra.mxu0 %v2110_v3  ;;  %2141 = vmatprep.subr.bf16.mxu1 %v2140_v12  ;;  %v1638_v12 = vld [vmem:[%s3086_s3 + $0x238] sm:$0xff] }
  0x7d   : > { %2113 = vmatprep.subr.bf16.mxu0 %v2112_v16  ;;  %v2154_v16 = vpack.c.bf16 %v1633_v10, %v1631_v9  ;;  %v2156_v20 = vpack.c.bf16 %v1638_v12, %v1636_v11  ;;  %v1656_v9 = vld [vmem:[%s3086_s3 + $0x2c8] sm:$0xff]  ;;  %v1658_v10 = vld [vmem:[%s3086_s3 + $0x2d8] sm:$0xff]  ;;  %v1683_v12 = vld [vmem:[%s3086_s3 + $0x3a0] sm:$0xff] }
  0x7e   : > { %v2176_v17 = vpack.c.bf16 %v1658_v10, %v1656_v9  ;;  %v1429_v9 = vld [vmem:[%s3088_s5 + $0x50] sm:$0xff]  ;;  %v1430_v10 = vld [vmem:[%s3088_s5 + $0x58] sm:$0xff] }
  0x7f   : > { %2143 = vmatpush1.bf16.msra.mxu1 %v2142_v13 }
  0x80   : > { %2115 = vmatpush1.bf16.msra.mxu0 %v2114_v19  ;;  %2145 = vmatprep.subr.bf16.mxu1 %v2144_v22  ;;  %v1637_v22 = vld [vmem:[%s3086_s3 + $0x230] sm:$0xff] }
  0x81   : > { %2117 = vmatprep.subr.bf16.mxu0 %v2116_v28  ;;  %v1667_v28 = vld [vmem:[%s3086_s3 + $0x320] sm:$0xff]  ;;  %v2158_v30 = vpack.c.bf16 %v1637_v22, %v1635_v21  ;;  %v1660_v22 = vld [vmem:[%s3086_s3 + $0x2e8] sm:$0xff] }
  0x82   : > { %v2190_v36 = vpack.c.bf16 %v1669_v29, %v1667_v28  ;;  %v1692_v28 = vld [vmem:[%s3086_s3 + $0x3e8] sm:$0xff]  ;;  %v1694_v29 = vld [vmem:[%s3086_s3 + $0x3f8] sm:$0xff] }
  0x83   : > { %2147 = vmatpush1.bf16.msra.mxu1 %v2146_v25  ;;  %v1642_v25 = vld [vmem:[%s3086_s3 + $0x258] sm:$0xff] }
  0x84   : > { %2119 = vmatpush1.bf16.msra.mxu0 %v2118_v31  ;;  %2149 = vmatprep.subr.bf16.mxu1 %v2148_v34  ;;  %v1672_v31 = vld [vmem:[%s3086_s3 + $0x348] sm:$0xff]  ;;  %v2160_v33 = vpack.c.bf16 %v1642_v25, %v1640_v24  ;;  %v1639_v34 = vld [vmem:[%s3086_s3 + $0x240] sm:$0xff] }
  0x85   : > { %2153 = vmatprep.subr.bf16.mxu0 %v2152_v40  ;;  %v2192_v39 = vpack.c.bf16 %v1674_v32, %v1672_v31  ;;  %v1671_v40 = vld [vmem:[%s3086_s3 + $0x340] sm:$0xff]  ;;  %v2162_v42 = vpack.c.bf16 %v1641_v35, %v1639_v34  ;;  %v1661_v32 = vld [vmem:[%s3086_s3 + $0x2f0] sm:$0xff]  ;;  %v2212_v34 = vpack.c.bf16 %v1694_v29, %v1692_v28 }
  0x86   : > { %v1687_v25 = vld [vmem:[%s3086_s3 + $0x3c0] sm:$0xff] }
  0x87   : > { %2151 = vmatpush1.bf16.msra.mxu1 %v2150_v37  ;;  %v1644_v37 = vld [vmem:[%s3086_s3 + $0x268] sm:$0xff]  ;;  %v1659_v31 = vld [vmem:[%s3086_s3 + $0x2e0] sm:$0xff] }
  0x88   : > { %2185 = vmatprep.subr.bf16.mxu1 %v2184_v43  ;;  %v1676_v43 = vld [vmem:[%s3086_s3 + $0x368] sm:$0xff]  ;;  %v1691_v35 = vld [vmem:[%s3086_s3 + $0x3e0] sm:$0xff] }
  0xe5   : > { %v456_v44 = vpop.f32.mrb[0].mxu1 }
  0xe6   : > { %v1902_v45 = vpop.f32.mrb[1].mxu1 }
  0xe7   : > { %v1643_v45 = vld [vmem:[%s3086_s3 + $0x260] sm:$0xff] }
  0xfc   : > { %v1729_v46 = vpop.f32.mrb[0].mxu0 }
  0xfd   : > { %v1730_v47 = vpop.f32.mrb[1].mxu0 }
  0xfe   : > { %v1731_v48 = vadd.f32 %v1730_v47, %v1729_v46  ;;  %v1645_v46 = vld [vmem:[%s3086_s3 + $0x270] sm:$0xff]  ;;  %v2194_v47 = vpack.c.bf16 %v1673_v41, %v1671_v40  ;;  %v1435_v41 = vld [vmem:[%s3088_s5 + $0x80] sm:$0xff] }
 0x100   : > { %v457_v49 = vadd.f32 %v1731_v48, %v456_v44  ;;  %v2164_v44 = vpack.c.bf16 %v1646_v38, %v1644_v37  ;;  %v1648_v48 = vld [vmem:[%s3086_s3 + $0x288] sm:$0xff]  ;;  %v2182_v37 = vpack.c.bf16 %v1661_v32, %v1659_v31 }
 0x105   : > { %v1769_v50 = vpop.f32.mrb[2].mxu1 }
 0x106   : > { %v1770_v51 = vpop.f32.mrb[3].mxu1 }
 0x107   : > { %v1771_v52 = vadd.f32 %v1770_v51, %v1769_v50  ;;  %v1675_v51 = vld [vmem:[%s3086_s3 + $0x360] sm:$0xff] }
 0x10d   : > { %v605_v53 = vpop.f32.mrb[4].mxu1 }
 0x10e   : > { %v606_v54 = vadd.f32 %v1771_v52, %v605_v53  ;;  %v1913_v55 = vpop.f32.mrb[5].mxu1  ;;  %v1677_v52 = vld [vmem:[%s3086_s3 + $0x370] sm:$0xff]  ;;  %v2166_v53 = vpack.c.bf16 %v1645_v46, %v1643_v45  ;;  %v1438_v45 = vld [vmem:[%s3088_s5 + $0x98] sm:$0xff] }
 0x10f   : > { %v1682_v55 = vld [vmem:[%s3086_s3 + $0x398] sm:$0xff] }
 0x110   : > { %v609_v56 = vmax.f32 %v457_v49, %v606_v54  ;;  %v1650_v49 = vld [vmem:[%s3086_s3 + $0x298] sm:$0xff]  ;;  %v1680_v54 = vld [vmem:[%s3086_s3 + $0x388] sm:$0xff] }
 0x115   : > { %v755_v57 = vpop.f32.mrb[6].mxu1 }
 0x116   : > { %v1924_v58 = vpop.f32.mrb[7].mxu1 }
 0x117   : > { %v1649_v58 = vld [vmem:[%s3086_s3 + $0x290] sm:$0xff] }
 0x11c   : > { %v1809_v59 = vpop.f32.mrb[2].mxu0 }
 0x11d   : > { %v1810_v60 = vpop.f32.mrb[3].mxu0 }
 0x11e   : > { %v1811_v61 = vadd.f32 %v1810_v60, %v1809_v59  ;;  %v2198_v59 = vpack.c.bf16 %v1677_v52, %v1675_v51  ;;  %v1652_v60 = vld [vmem:[%s3086_s3 + $0x2a8] sm:$0xff] }
 0x11f   : > { %v1440_v51 = vld [vmem:[%s3088_s5 + $0xa8] sm:$0xff] }
 0x120   : > { %v756_v62 = vadd.f32 %v1811_v61, %v755_v57  ;;  %v1647_v57 = vld [vmem:[%s3086_s3 + $0x280] sm:$0xff]  ;;  %v1654_v61 = vld [vmem:[%s3086_s3 + $0x2b8] sm:$0xff] }
 0x122   : > { %v759_v63 = vmax.f32 %v609_v56, %v756_v62  ;;  %v2168_v56 = vpack.c.bf16 %v1650_v49, %v1648_v48  ;;  %v2200_v62 = vpack.c.bf16 %v1682_v55, %v1680_v54  ;;  %v1421_v48 = vld [vmem:[%s3088_s5 + $0x10] sm:$0xff]  ;;  %v1422_v49 = vld [vmem:[%s3088_s5 + $0x18] sm:$0xff]  ;;  %v1423_v54 = vld [vmem:[%s3088_s5 + $0x20] sm:$0xff] }
 0x123   : > { %v2222_v52 = vpack.c.bf16 %v1422_v49, %v1421_v48  ;;  %v1424_v55 = vld [vmem:[%s3088_s5 + $0x28] sm:$0xff] }
 0x135   : > { %v1849_v0 = vpop.f32.mrb[8].mxu1 }
 0x136   : > { %v1850_v1 = vpop.f32.mrb[9].mxu1 }
 0x137   : > { %v1851_v2 = vadd.f32 %v1850_v1, %v1849_v0  ;;  %v1681_v0 = vld [vmem:[%s3086_s3 + $0x390] sm:$0xff]  ;;  %v2170_v1 = vpack.c.bf16 %v1649_v58, %v1647_v57  ;;  %v1442_v57 = vld [vmem:[%s3088_s5 + $0xb8] sm:$0xff]  ;;  %v2226_v58 = vpack.c.bf16 %v1424_v55, %v1423_v54 }
 0x13d   : > { %v905_v4 = vpop.f32.mrb[10].mxu1 }
 0x13e   : > { %v906_v5 = vadd.f32 %v1851_v2, %v905_v4  ;;  %v1935_v6 = vpop.f32.mrb[11].mxu1  ;;  %v1684_v2 = vld [vmem:[%s3086_s3 + $0x3a8] sm:$0xff]  ;;  %v1686_v4 = vld [vmem:[%s3086_s3 + $0x3b8] sm:$0xff] }
 0x13f   : > { %v1651_v6 = vld [vmem:[%s3086_s3 + $0x2a0] sm:$0xff]  ;;  %v2204_v11 = vpack.c.bf16 %v1686_v4, %v1684_v2  ;;  %v1428_v4 = vld [vmem:[%s3088_s5 + $0x48] sm:$0xff] }
 0x140   : > { %v909_v3 = vmax.f32 %v759_v63, %v906_v5  ;;  %v1679_v63 = vld [vmem:[%s3086_s3 + $0x380] sm:$0xff]  ;;  %v2172_v5 = vpack.c.bf16 %v1654_v61, %v1652_v60  ;;  %v1425_v60 = vld [vmem:[%s3088_s5 + $0x30] sm:$0xff]  ;;  %v1426_v61 = vld [vmem:[%s3088_s5 + $0x38] sm:$0xff] }
 0x141   : > { %v1427_v2 = vld [vmem:[%s3088_s5 + $0x40] sm:$0xff] }
 0x142   : > { %v917_v13 = vadd.f32 %v1598_v7, %v909_v3  ;;  %v1653_v7 = vld [vmem:[%s3086_s3 + $0x2b0] sm:$0xff]  ;;  %v2202_v3 = vpack.c.bf16 %v1681_v0, %v1679_v63  ;;  %v1443_v63 = vld [vmem:[%s3088_s5 + $0xc0] sm:$0xff]  ;;  %v1444_v0 = vld [vmem:[%s3088_s5 + $0xc8] sm:$0xff] }
 0x143   : > { %v2174_v14 = vpack.c.bf16 %v1653_v7, %v1651_v6  ;;  %v1445_v6 = vld [vmem:[%s3088_s5 + $0xd0] sm:$0xff]  ;;  %v1446_v7 = vld [vmem:[%s3088_s5 + $0xd8] sm:$0xff] }
 0x144   : > { %v2810_v19 = vmax.f32 %v917_v13, 0.0  ;;  %v1685_v13 = vld [vmem:[%s3086_s3 + $0x3b0] sm:$0xff] }
 0x145   : > { %v2206_v21 = vpack.c.bf16 %v1685_v13, %v1683_v12  ;;  %v1447_v12 = vld [vmem:[%s3088_s5 + $0xe0] sm:$0xff]  ;;  %v1448_v13 = vld [vmem:[%s3088_s5 + $0xe8] sm:$0xff] }
 0x146   : > { %1017 = vmatmul.mubr.f32.vlgmr.msra.gmra.mrb[4].mxu0 %v2810_v19  ;;  %v1076_v26 = vrot.slane %v2810_v19, 1  ;;  %v1326_v40 = vrot.slane %v2810_v19, 3 }
 0x147   : > { %2155 = vmatpush1.bf16.msra.mxu0 %v2154_v16  ;;  %1267 = vmatprep.mubr.f32.mxu0 %v2275_v8  ;;  %v1690_v16 = vld [vmem:[%s3086_s3 + $0x3d8] sm:$0xff] }
 0x148   : > { %1143 = vmatmul.mubr.f32.vlgmr.msra.gmra.mrb[12].mxu1 %v1076_v26  ;;  %2157 = vmatprep.subr.bf16.mxu0 %v2156_v20  ;;  %v1657_v20 = vld [vmem:[%s3086_s3 + $0x2d0] sm:$0xff]  ;;  %v2208_v24 = vpack.c.bf16 %v1690_v16, %v1688_v15  ;;  %v1431_v15 = vld [vmem:[%s3088_s5 + $0x60] sm:$0xff]  ;;  %v1432_v16 = vld [vmem:[%s3088_s5 + $0x68] sm:$0xff] }
 0x149   : > { %2187 = vmatpush1.bf16.msra.mxu1 %v2186_v23  ;;  %1392 = vmatprep.mubr.f32.mxu1 %v2275_v8  ;;  %v1678_v8 = vld [vmem:[%s3086_s3 + $0x378] sm:$0xff]  ;;  %v1689_v26 = vld [vmem:[%s3086_s3 + $0x3d0] sm:$0xff] }
 0x14a   : > { %2189 = vmatprep.subr.bf16.mxu1 %v2188_v27  ;;  %v2196_v50 = vpack.c.bf16 %v1678_v8, %v1676_v43  ;;  %v1662_v23 = vld [vmem:[%s3086_s3 + $0x2f8] sm:$0xff]  ;;  %v2178_v27 = vpack.c.bf16 %v1657_v20, %v1655_v18  ;;  %v1419_v43 = vld [vmem:[%s3088_s5] sm:$0xff]  ;;  %v1449_v18 = vld [vmem:[%s3088_s5 + $0xf0] sm:$0xff] }
 0x14b   : > { %2159 = vmatpush1.bf16.msra.mxu0 %v2158_v30  ;;  %v2180_v30 = vpack.c.bf16 %v1662_v23, %v1660_v22  ;;  %v1450_v20 = vld [vmem:[%s3088_s5 + $0xf8] sm:$0xff] }
 0x14c   : > { %2161 = vmatprep.subr.bf16.mxu0 %v2160_v33  ;;  %v2210_v33 = vpack.c.bf16 %v1689_v26, %v1687_v25  ;;  %v2244_v22 = vpack.c.bf16 %v1450_v20, %v1449_v18  ;;  %v1434_v23 = vld [vmem:[%s3088_s5 + $0x78] sm:$0xff]  ;;  %v2276_v25 = vmov 1966171168  }
 0x14d   : > { %2191 = vmatpush1.bf16.msra.mxu1 %v2190_v36  ;;  %v1693_v36 = vld [vmem:[%s3086_s3 + $0x3f0] sm:$0xff]  ;;  %v1027_v26 = vunpack.c.l.s4 %v2276_v25 }
 0x14e   : > { %2193 = vmatprep.subr.bf16.mxu1 %v2192_v39  ;;  %v2214_v38 = vpack.c.bf16 %v1693_v36, %v1691_v35  ;;  %v1201_v39 = vrot.slane %v2810_v19, 2  ;;  %v1437_v19 = vld [vmem:[%s3088_s5 + $0x90] sm:$0xff] }
 0x14f   : > { %2163 = vmatpush1.bf16.msra.mxu0 %v2162_v42  ;;  %v1436_v42 = vld [vmem:[%s3088_s5 + $0x88] sm:$0xff]  ;;  %v1028_v28 = vunpack.c.0.s8 %v1027_v26 }
 0x150   : > { %2165 = vmatprep.subr.bf16.mxu0 %v2164_v44  ;;  %v2216_v8 = vpack.c.bf16 %v1436_v42, %v1435_v41  ;;  %v1420_v44 = vld [vmem:[%s3088_s5 + $0x8] sm:$0xff] }
 0x151   : > { %2195 = vmatpush1.bf16.msra.mxu1 %v2194_v47  ;;  %v2218_v46 = vpack.c.bf16 %v1420_v44, %v1419_v43  ;;  %v2220_v47 = vpack.c.bf16 %v1438_v45, %v1437_v19 }
 0x152   : > { %2197 = vmatprep.subr.bf16.mxu1 %v2196_v50  ;;  %v1439_v50 = vld [vmem:[%s3088_s5 + $0xa0] sm:$0xff] }
 0x153   : > { %2167 = vmatpush1.bf16.msra.mxu0 %v2166_v53  ;;  %v2224_v53 = vpack.c.bf16 %v1440_v51, %v1439_v50 }
 0x154   : > { %2169 = vmatprep.subr.bf16.mxu0 %v2168_v56  ;;  %v1441_v56 = vld [vmem:[%s3088_s5 + $0xb0] sm:$0xff] }
 0x155   : > { %2199 = vmatpush1.bf16.msra.mxu1 %v2198_v59  ;;  %v2228_v59 = vpack.c.bf16 %v1442_v57, %v1441_v56 }
 0x156   : > { %2201 = vmatprep.subr.bf16.mxu1 %v2200_v62  ;;  %v2230_v62 = vpack.c.bf16 %v1426_v61, %v1425_v60  ;;  %v1451_v60 = vld [vmem:[%s3089_s6] sm:$0x1] }
 0x157   : > { %2171 = vmatpush1.bf16.msra.mxu0 %v2170_v1  ;;  %v2232_v1 = vpack.c.bf16 %v1444_v0, %v1443_v63 }
 0x158   : > { %2173 = vmatprep.subr.bf16.mxu0 %v2172_v5  ;;  %v2234_v5 = vpack.c.bf16 %v1428_v4, %v1427_v2 }
 0x159   : > { %2203 = vmatpush1.bf16.msra.mxu1 %v2202_v3  ;;  %v2236_v3 = vpack.c.bf16 %v1446_v7, %v1445_v6 }
 0x15a   : > { %2205 = vmatprep.subr.bf16.mxu1 %v2204_v11  ;;  %v2238_v11 = vpack.c.bf16 %v1430_v10, %v1429_v9 }
 0x15b   : > { %2175 = vmatpush1.bf16.msra.mxu0 %v2174_v14  ;;  %v2240_v14 = vpack.c.bf16 %v1448_v13, %v1447_v12 }
 0x15c   : > { %2177 = vmatprep.subr.bf16.mxu0 %v2176_v17  ;;  %v2242_v17 = vpack.c.bf16 %v1432_v16, %v1431_v15 }
 0x15d   : > { %2207 = vmatpush1.bf16.msra.mxu1 %v2206_v21  ;;  %v1433_v21 = vld [vmem:[%s3088_s5 + $0x70] sm:$0xff] }
 0x15e   : > { %2209 = vmatprep.subr.bf16.mxu1 %v2208_v24  ;;  %v2246_v24 = vpack.c.bf16 %v1434_v23, %v1433_v21 }
 0x15f   : > { %2179 = vmatpush1.bf16.msra.mxu0 %v2178_v27  ;;  %v1029_v27 = vlaneseq }
 0x160   : > { %2181 = vmatprep.subr.bf16.mxu0 %v2180_v30 }
 0x161   : > { %2211 = vmatpush1.bf16.msra.mxu1 %v2210_v33  ;;  %v1030_v29 = vshrl.u32 %v1029_v27, 7 }
 0x162   : > { %2213 = vmatprep.subr.bf16.mxu1 %v2212_v34 }
 0x163   : > { %2183 = vmatpush1.bf16.msra.mxu0 %v2182_v37  ;;  %v1031_v31 = vsub.s32 %v1028_v28, %v1030_v29  ;;  %v1459_v54 = vsub.s32 1, %v1030_v29  ;;  %v1455_v55 = vsub.s32 0, %v1030_v29 }
 0x164   : > { %2217 = vmatprep.subr.bf16.mxu0 %v2216_v8 }
 0x165   : > { %2215 = vmatpush1.bf16.msra.mxu1 %v2214_v38  ;;  %v919_v38 = vld [vmem:[%s3087_s4] sm:$0x3] }
 0x166   : > { %1268 = vmatmul.mubr.f32.vlgmr.msra.gmra.mrb[6].mxu0 %v1201_v39 }
 0x167   : > { %2219 = vmatpush3.bf16.msra.mxu0 %v2218_v46 }
 0x168   : > { %1393 = vmatmul.mubr.f32.vlgmr.msra.gmra.mrb[14].mxu1 %v1326_v40  ;;  %2221 = vmatprep.subr.bf16.mxu0 %v2220_v47 }
 0x16b   : > { %2223 = vmatpush3.bf16.msra.mxu0 %v2222_v52 }
 0x16c   : > { %2225 = vmatprep.subr.bf16.mxu0 %v2224_v53 }
 0x16f   : > { %2227 = vmatpush3.bf16.msra.mxu0 %v2226_v58 }
 0x170   : > { %2229 = vmatprep.subr.bf16.mxu0 %v2228_v59 }
 0x173   : > { %2231 = vmatpush3.bf16.msra.mxu0 %v2230_v62 }
 0x174   : > { %2233 = vmatprep.subr.bf16.mxu0 %v2232_v1 }
 0x177   : > { %2235 = vmatpush3.bf16.msra.mxu0 %v2234_v5 }
 0x178   : > { %2237 = vmatprep.subr.bf16.mxu0 %v2236_v3 }
 0x17b   : > { %2239 = vmatpush3.bf16.msra.mxu0 %v2238_v11 }
 0x17c   : > { %2241 = vmatprep.subr.bf16.mxu0 %v2240_v14 }
 0x17f   : > { %2243 = vmatpush3.bf16.msra.mxu0 %v2242_v17 }
 0x180   : > { %2245 = vmatprep.subr.bf16.mxu0 %v2244_v22 }
 0x183   : > { %2247 = vmatpush3.bf16.msra.mxu0 %v2246_v24 }
 0x219   : > { %v1018_v30 = vpop.f32.mrb[4].mxu0 }
 0x21a   : > { %v1020_v32 = vpop.f32.mrb[5].mxu0 }
 0x21b   : > { %v1025_v33 = vcombine.low %v1018_v30, %v1020_v32  ;;  %v1144_v34 = vpop.f32.mrb[12].mxu1 }
 0x21c   : > { %v1146_v35 = vpop.f32.mrb[13].mxu1 }
 0x21d   : > { %v1032_v36 = vrot.slane %v1025_v33, %v1031_v31  ;;  %v1151_v37 = vcombine.low %v1144_v34, %v1146_v35 }
 0x21f   : > { %v1039_v39 = vrot.slane %v1032_v36, %v1031_v31  ;;  %v1158_v40 = vrot.slane %v1151_v37, %v1031_v31 }
 0x221   : > { %v1041_v41 = vadd.f32 %v1039_v39, %v919_v38  ;;  %v1165_v42 = vrot.slane %v1158_v40, %v1031_v31 }
 0x223   : > { %v1167_v43 = vadd.f32 %v1165_v42, %v1041_v41 }
 0x239   : > { %v1269_v8 = vpop.f32.mrb[6].mxu0 }
 0x23a   : > { %v1271_v44 = vpop.f32.mrb[7].mxu0 }
 0x23b   : > { %v1276_v19 = vcombine.low %v1269_v8, %v1271_v44  ;;  %v1394_v45 = vpop.f32.mrb[14].mxu1 }
 0x23c   : > { %v1396_v46 = vpop.f32.mrb[15].mxu1 }
 0x23d   : > { %v1283_v47 = vrot.slane %v1276_v19, %v1031_v31  ;;  %v1401_v48 = vcombine.low %v1394_v45, %v1396_v46 }
 0x23f   : > { %v1290_v49 = vrot.slane %v1283_v47, %v1031_v31  ;;  %v1408_v50 = vrot.slane %v1401_v48, %v1031_v31 }
 0x241   : > { %v1292_v51 = vadd.f32 %v1290_v49, %v1167_v43  ;;  %v1415_v52 = vrot.slane %v1408_v50, %v1031_v31 }
 0x243   : > { %v1417_v53 = vadd.f32 %v1415_v52, %v1292_v51 }
 0x245   : > { %v1418_v56 = vmax.f32 %v1417_v53, 0.0 }
 0x247   : > { %v1460_v57 = vrot.slane %v1418_v56, %v1459_v54  ;;  %v1456_v58 = vrot.slane %v1418_v56, %v1455_v55 }
 0x249   : > { %1527 = vmatprep.mubr.f32.mxu0 %v1460_v57 }
 0x24a   : > { %1528 = vmatmul.mubr.f32.vlgmr.msra.gmra.mrb[8].mxu0 %v1456_v58 }
 0x31d   : > { %v1889_v59 = vpop.f32.mrb[8].mxu0 }
 0x31e   : > { %v1890_v61 = vpop.f32.mrb[9].mxu0 }
 0x31f   : > { %v1891_v62 = vadd.f32 %v1890_v61, %v1889_v59 }
 0x321   : > { %v1530_v63 = vadd.f32 %v1891_v62, %v1451_v60 }
 0x323   : > { %1534 = vst.msk [vmem:[%s274_s9] sm:$0x1] %vm1533_vm2, %v1530_v63 }
 0x324 PF: > { %s17_s24 = sadd.s32 1, %s2271_s24  }
 0x325   : > { %p14_p4 = scmp.ge.s32.totalorder %s17_s24, 4  }
 0x327   :  { %16 = sbr.rel (!%p14_p4) target bundleno = 1 (0x1), region = 84 }

// kernel: _lambda_.5
= control target key start
LH: loop header
LB: loop body
LE: loop exit
PB: predicated region body
PF: predicated region fallthrough
CT: control target
= control target key end

     0   :  { %s487_s9 = smov 0   ;;  %s586_s0 = inlined_call_operand.vmem [shape: f32[2,4,256], index: 0, kind: input, shape index: {}]   ;;  %s587_s1 = inlined_call_operand.vmem [shape: f32[2,256,256], index: 1, kind: input, shape index: {}]   ;;  %s588_s2 = inlined_call_operand.vmem [shape: f32[2,4,256], index: 2, kind: output, shape index: {}]  }
   0x1 LB: > { %s375_s10 = sadd.s32 4294967295, %s470_s9   ;;  %p379_p0 = scmp.ge.s32.totalorder %s470_s9, 1  ;;  %s470_s9 = sphi %s487_s9, %s12_s9  }
   0x2   : > { %p122_p1 = scmp.lt.s32.totalorder %s470_s9, 3 }
   0x4   : > { %p123_p2 = pnand %p379_p0, %p122_p1 }
   0x5   : > { %p149_p3 = scmp.lt.s32.totalorder (!%p123_p2), %s375_s10, 1 }
   0x6   : > { %126 = sbr.rel (%p123_p2) target bundleno = 299 (0x12b), region = 28 }
   0xd   : > { %s590_s10 = smov (!%p149_p3, %s375_s10), 1 }
   0xe   : > { %s389_s11 = sshll.u32 %s590_s10, 9  ;;  %s388_s15 = sshll.u32 %s590_s10, 3 }
   0xf   : > { %s501_s14 = scalar_lea.vmem %s587_s1, %s389_s11  ;;  %s153_s18 = scalar_lea.vmem %s586_s0, %s388_s15 }
  0x10   : > { %v166_v0 = vld [vmem:[%s501_s14 + $0x8] sm:$0xff]  ;;  %v168_v1 = vld [vmem:[%s501_s14 + $0x18] sm:$0xff]  ;;  %v165_v2 = vld [vmem:[%s501_s14] sm:$0xff]  ;;  %s163_s21 = scalar_lea.vmem %s588_s2, %s388_s15 }
  0x11   : > { %v391_v3 = vpack.c.bf16 %v168_v1, %v166_v0  ;;  %v167_v4 = vld [vmem:[%s501_s14 + $0x10] sm:$0xff]  ;;  %v170_v5 = vld [vmem:[%s501_s14 + $0x28] sm:$0xff]  ;;  %v172_v6 = vld [vmem:[%s501_s14 + $0x38] sm:$0xff] }
  0x12   : > { %v393_v7 = vpack.c.bf16 %v167_v4, %v165_v2  ;;  %v395_v8 = vpack.c.bf16 %v172_v6, %v170_v5  ;;  %v169_v9 = vld [vmem:[%s501_s14 + $0x20] sm:$0xff]  ;;  %v171_v10 = vld [vmem:[%s501_s14 + $0x30] sm:$0xff]  ;;  %v174_v11 = vld [vmem:[%s501_s14 + $0x48] sm:$0xff] }
  0x13   : > { %392 = vmatprep.subr.bf16.mxu0 %v391_v3  ;;  %v176_v12 = vld [vmem:[%s501_s14 + $0x58] sm:$0xff]  ;;  %v397_v13 = vpack.c.bf16 %v171_v10, %v169_v9  ;;  %v173_v15 = vld [vmem:[%s501_s14 + $0x40] sm:$0xff]  ;;  %v175_v16 = vld [vmem:[%s501_s14 + $0x50] sm:$0xff] }
  0x14   : > { %394 = vmatpush1.bf16.msra.mxu0 %v393_v7  ;;  %v399_v14 = vpack.c.bf16 %v176_v12, %v174_v11  ;;  %v178_v17 = vld [vmem:[%s501_s14 + $0x68] sm:$0xff]  ;;  %v180_v18 = vld [vmem:[%s501_s14 + $0x78] sm:$0xff]  ;;  %v401_v19 = vpack.c.bf16 %v175_v16, %v173_v15  ;;  %v177_v21 = vld [vmem:[%s501_s14 + $0x60] sm:$0xff] }
  0x15   : > { %396 = vmatprep.subr.bf16.mxu0 %v395_v8  ;;  %v403_v20 = vpack.c.bf16 %v180_v18, %v178_v17  ;;  %v179_v22 = vld [vmem:[%s501_s14 + $0x70] sm:$0xff]  ;;  %v182_v23 = vld [vmem:[%s501_s14 + $0x88] sm:$0xff]  ;;  %v184_v24 = vld [vmem:[%s501_s14 + $0x98] sm:$0xff] }
  0x16   : > { %v405_v25 = vpack.c.bf16 %v179_v22, %v177_v21  ;;  %v407_v26 = vpack.c.bf16 %v184_v24, %v182_v23  ;;  %v181_v27 = vld [vmem:[%s501_s14 + $0x80] sm:$0xff]  ;;  %v183_v28 = vld [vmem:[%s501_s14 + $0x90] sm:$0xff]  ;;  %v186_v29 = vld [vmem:[%s501_s14 + $0xa8] sm:$0xff] }
  0x17   : > { %v188_v30 = vld [vmem:[%s501_s14 + $0xb8] sm:$0xff]  ;;  %v409_v31 = vpack.c.bf16 %v183_v28, %v181_v27  ;;  %v185_v33 = vld [vmem:[%s501_s14 + $0xa0] sm:$0xff]  ;;  %v187_v34 = vld [vmem:[%s501_s14 + $0xb0] sm:$0xff] }
  0x18   : > { %398 = vmatpush1.bf16.msra.mxu0 %v397_v13  ;;  %v411_v32 = vpack.c.bf16 %v188_v30, %v186_v29  ;;  %v190_v35 = vld [vmem:[%s501_s14 + $0xc8] sm:$0xff]  ;;  %v192_v36 = vld [vmem:[%s501_s14 + $0xd8] sm:$0xff]  ;;  %v413_v37 = vpack.c.bf16 %v187_v34, %v185_v33  ;;  %v189_v39 = vld [vmem:[%s501_s14 + $0xc0] sm:$0xff] }
  0x19   : > { %400 = vmatprep.subr.bf16.mxu0 %v399_v14  ;;  %v415_v38 = vpack.c.bf16 %v192_v36, %v190_v35  ;;  %v191_v40 = vld [vmem:[%s501_s14 + $0xd0] sm:$0xff]  ;;  %v537_v41 = vld [vmem:[%s153_s18] sm:$0xff]  ;;  %v194_v42 = vld [vmem:[%s501_s14 + $0xe8] sm:$0xff] }
  0x1a   : > { %v196_v43 = vld [vmem:[%s501_s14 + $0xf8] sm:$0xff]  ;;  %v230_v44 = vcombine.high %v537_v41, %v537_v41  ;;  %v417_v45 = vpack.c.bf16 %v191_v40, %v189_v39  ;;  %v193_v47 = vld [vmem:[%s501_s14 + $0xe0] sm:$0xff]  ;;  %v195_v48 = vld [vmem:[%s501_s14 + $0xf0] sm:$0xff] }
  0x1b   : > { %v419_v46 = vpack.c.bf16 %v196_v43, %v194_v42  ;;  %v198_v49 = vld [vmem:[%s501_s14 + $0x108] sm:$0xff]  ;;  %v200_v50 = vld [vmem:[%s501_s14 + $0x118] sm:$0xff]  ;;  %v421_v51 = vpack.c.bf16 %v195_v48, %v193_v47  ;;  %v197_v53 = vld [vmem:[%s501_s14 + $0x100] sm:$0xff] }
  0x1c   : > { %402 = vmatpush1.bf16.msra.mxu0 %v401_v19  ;;  %296 = vmatprep.mubr.f32.mxu0 %v230_v44  ;;  %v423_v52 = vpack.c.bf16 %v200_v50, %v198_v49  ;;  %v199_v54 = vld [vmem:[%s501_s14 + $0x110] sm:$0xff]  ;;  %v202_v55 = vld [vmem:[%s501_s14 + $0x128] sm:$0xff]  ;;  %v204_v56 = vld [vmem:[%s501_s14 + $0x138] sm:$0xff] }
  0x1d   : > { %404 = vmatprep.subr.bf16.mxu0 %v403_v20  ;;  %v425_v57 = vpack.c.bf16 %v199_v54, %v197_v53  ;;  %v427_v58 = vpack.c.bf16 %v204_v56, %v202_v55  ;;  %v201_v59 = vld [vmem:[%s501_s14 + $0x120] sm:$0xff]  ;;  %v203_v60 = vld [vmem:[%s501_s14 + $0x130] sm:$0xff]  ;;  %v206_v61 = vld [vmem:[%s501_s14 + $0x148] sm:$0xff] }
  0x1e   : > { %v208_v62 = vld [vmem:[%s501_s14 + $0x158] sm:$0xff]  ;;  %v429_v63 = vpack.c.bf16 %v203_v60, %v201_v59  ;;  %v205_v1 = vld [vmem:[%s501_s14 + $0x140] sm:$0xff]  ;;  %v207_v2 = vld [vmem:[%s501_s14 + $0x150] sm:$0xff] }
  0x1f   : > { %v431_v0 = vpack.c.bf16 %v208_v62, %v206_v61  ;;  %v210_v3 = vld [vmem:[%s501_s14 + $0x168] sm:$0xff]  ;;  %v212_v4 = vld [vmem:[%s501_s14 + $0x178] sm:$0xff]  ;;  %v433_v5 = vpack.c.bf16 %v207_v2, %v205_v1  ;;  %v209_v7 = vld [vmem:[%s501_s14 + $0x160] sm:$0xff] }
  0x20   : > { %406 = vmatpush1.bf16.msra.mxu0 %v405_v25  ;;  %v435_v6 = vpack.c.bf16 %v212_v4, %v210_v3  ;;  %v211_v8 = vld [vmem:[%s501_s14 + $0x170] sm:$0xff]  ;;  %v214_v9 = vld [vmem:[%s501_s14 + $0x188] sm:$0xff]  ;;  %v216_v10 = vld [vmem:[%s501_s14 + $0x198] sm:$0xff] }
  0x21   : > { %408 = vmatprep.subr.bf16.mxu0 %v407_v26  ;;  %v437_v11 = vpack.c.bf16 %v211_v8, %v209_v7  ;;  %v439_v12 = vpack.c.bf16 %v216_v10, %v214_v9  ;;  %v213_v13 = vld [vmem:[%s501_s14 + $0x180] sm:$0xff]  ;;  %v215_v14 = vld [vmem:[%s501_s14 + $0x190] sm:$0xff]  ;;  %v218_v15 = vld [vmem:[%s501_s14 + $0x1a8] sm:$0xff] }
  0x22   : > { %v220_v16 = vld [vmem:[%s501_s14 + $0x1b8] sm:$0xff]  ;;  %v441_v17 = vpack.c.bf16 %v215_v14, %v213_v13  ;;  %v217_v19 = vld [vmem:[%s501_s14 + $0x1a0] sm:$0xff]  ;;  %v219_v20 = vld [vmem:[%s501_s14 + $0x1b0] sm:$0xff] }
  0x23   : > { %v443_v18 = vpack.c.bf16 %v220_v16, %v218_v15  ;;  %v222_v21 = vld [vmem:[%s501_s14 + $0x1c8] sm:$0xff]  ;;  %v224_v22 = vld [vmem:[%s501_s14 + $0x1d8] sm:$0xff]  ;;  %v445_v23 = vpack.c.bf16 %v219_v20, %v217_v19  ;;  %v221_v25 = vld [vmem:[%s501_s14 + $0x1c0] sm:$0xff] }
  0x24   : > { %410 = vmatpush1.bf16.msra.mxu0 %v409_v31  ;;  %v447_v24 = vpack.c.bf16 %v224_v22, %v222_v21  ;;  %v223_v26 = vld [vmem:[%s501_s14 + $0x1d0] sm:$0xff]  ;;  %v226_v27 = vld [vmem:[%s501_s14 + $0x1e8] sm:$0xff]  ;;  %v228_v28 = vld [vmem:[%s501_s14 + $0x1f8] sm:$0xff] }
  0x25   : > { %412 = vmatprep.subr.bf16.mxu0 %v411_v32  ;;  %v449_v29 = vpack.c.bf16 %v223_v26, %v221_v25  ;;  %v451_v30 = vpack.c.bf16 %v228_v28, %v226_v27  ;;  %v225_v31 = vld [vmem:[%s501_s14 + $0x1e0] sm:$0xff]  ;;  %v227_v32 = vld [vmem:[%s501_s14 + $0x1f0] sm:$0xff] }
  0x26   : > { %v453_v33 = vpack.c.bf16 %v227_v32, %v225_v31 }
  0x28   : > { %414 = vmatpush1.bf16.msra.mxu0 %v413_v37 }
  0x29   : > { %416 = vmatprep.subr.bf16.mxu0 %v415_v38 }
  0x2c   : > { %418 = vmatpush1.bf16.msra.mxu0 %v417_v45 }
  0x2d   : > { %420 = vmatprep.subr.bf16.mxu0 %v419_v46 }
  0x30   : > { %422 = vmatpush1.bf16.msra.mxu0 %v421_v51 }
  0x31   : > { %424 = vmatprep.subr.bf16.mxu0 %v423_v52 }
  0x34   : > { %426 = vmatpush1.bf16.msra.mxu0 %v425_v57 }
  0x35   : > { %428 = vmatprep.subr.bf16.mxu0 %v427_v58 }
  0x38   : > { %430 = vmatpush1.bf16.msra.mxu0 %v429_v63 }
  0x39   : > { %432 = vmatprep.subr.bf16.mxu0 %v431_v0 }
  0x3c   : > { %434 = vmatpush1.bf16.msra.mxu0 %v433_v5 }
  0x3d   : > { %436 = vmatprep.subr.bf16.mxu0 %v435_v6 }
  0x40   : > { %438 = vmatpush1.bf16.msra.mxu0 %v437_v11 }
  0x41   : > { %440 = vmatprep.subr.bf16.mxu0 %v439_v12 }
  0x44   : > { %442 = vmatpush1.bf16.msra.mxu0 %v441_v17 }
  0x45   : > { %444 = vmatprep.subr.bf16.mxu0 %v443_v18 }
  0x48   : > { %446 = vmatpush1.bf16.msra.mxu0 %v445_v23 }
  0x49   : > { %448 = vmatprep.subr.bf16.mxu0 %v447_v24 }
  0x4c   : > { %450 = vmatpush1.bf16.msra.mxu0 %v449_v29 }
  0x4d   : > { %452 = vmatprep.subr.bf16.mxu0 %v451_v30 }
  0x50   : > { %454 = vmatpush1.bf16.msra.mxu0 %v453_v33 }
  0x53   : > { %297 = vmatmul.mubr.f32.vlgmr.msra.gmra.mrb[0].mxu0 %v537_v41 }
 0x126   : > { %v298_v34 = vpop.f32.mrb[0].mxu0 }
 0x127   : > { %v300_v35 = vpop.f32.mrb[1].mxu0 }
 0x128   : > { %v305_v36 = vcombine.low %v298_v34, %v300_v35 }
 0x12a   : > { %307 = vst [vmem:[%s163_s21] sm:$0xff] %v305_v36 }
 0x12b PF: > { %s12_s9 = sadd.s32 1, %s470_s9  }
 0x12c   : > { %p9_p4 = scmp.ge.s32.totalorder %s12_s9, 4  }
 0x12e   :  { %11 = sbr.rel (!%p9_p4) target bundleno = 1 (0x1), region = 61 }

</bundles_post_ra>
